<compile_context>
chip_gen: v7x
topology: tpu7x:2x2x1
jax: 0.10.0
libtpu: 0.0.40
codegen_flags: <defaults>
</compile_context>

<pallas_src>
import functools

import jax
import jax.numpy as jnp
import numpy as np
from jax import lax
from jax.experimental import pallas as pl
from jax.experimental.pallas import tpu as pltpu

_LANE = 128   # vreg lane width


def _vmem_limit_bytes():
    # v5e/v6e have 128 MiB VMEM per core, v7x only 64 MiB: size per generation.
    try:
        cap = pltpu.get_tpu_info().vmem_capacity_bytes
        return int(min(cap * 3 // 4, 100 * 1024 * 1024))
    except Exception:
        return 32 * 1024 * 1024


def _pick_images_per_tile(n, rows_per_image, max_rows=2048):
    """Largest images-per-tile that keeps ~<=2048 conv rows per step and keeps
    the grid >= 2 (so both v7x TensorCores get work)."""
    nb = 1
    for cand in range(1, n + 1):
        if n % cand:
            continue
        if cand * rows_per_image > max_rows:
            break
        if n >= 2 and n // cand < 2:
            break
        nb = cand
    return nb


def _conv_tile(x_ref, wdw_ref, wpw_ref, b_ref, *, k, stride, h_out, w_out):
    """Depthwise (VPU, f32) + pointwise 1x1 (MXU, bf16 in / f32 acc) conv of a
    tile of `nb` whole padded images.  Returns (nb*h_out*w_out, Cpad) f32."""
    nb, _, _, cin = x_ref.shape
    wdw = wdw_ref[...].astype(jnp.float32)                  # (K*K, Cin)
    acc = None
    for kh in range(k):
        for kw in range(k):
            if stride == 1:
                win = x_ref[:, pl.ds(kh, h_out), pl.ds(kw, w_out), :]
            else:
                win = x_ref[:, pl.ds(kh, h_out, stride), pl.ds(kw, w_out, stride), :]
            tap = wdw[kh * k + kw: kh * k + kw + 1]          # (1, Cin)
            term = win.astype(jnp.float32) * tap             # VPU, f32
            acc = term if acc is None else acc + term
    dw = acc.reshape(nb * h_out * w_out, cin)                # depthwise output
    y = jnp.dot(dw.astype(jnp.bfloat16), wpw_ref[...],      # pointwise on MXU
                preferred_element_type=jnp.float32)
    return y + b_ref[...].astype(jnp.float32)                # (M_tile, Cpad)


def _conv_stats_kernel(x_ref, wdw_ref, wpw_ref, b_ref, stats_ref,
                       *, k, stride, h_out, w_out):
    """Pass 1: conv tile + packed, centered per-tile BN partial stats."""
    y = _conv_tile(x_ref, wdw_ref, wpw_ref, b_ref,
                   k=k, stride=stride, h_out=h_out, w_out=w_out)
    m_tile = y.shape[0]
    s = jnp.sum(y, axis=0, keepdims=True)                    # (1, Cpad)
    mu = s * (1.0 / m_tile)
    d = y - mu
    m2 = jnp.sum(d * d, axis=0, keepdims=True)               # centered SSQ
    stats_ref[...] = jnp.concatenate([s, m2], axis=0).reshape(1, 2, y.shape[1])


def _conv_bn_relu_kernel(x_ref, wdw_ref, wpw_ref, b_ref, scale_ref, shift_ref,
                         o_ref, *, k, stride, h_out, w_out):
    """Pass 2: recompute conv tile, apply folded BN scale/shift + ReLU."""
    y = _conv_tile(x_ref, wdw_ref, wpw_ref, b_ref,
                   k=k, stride=stride, h_out=h_out, w_out=w_out)
    o = jnp.maximum(y * scale_ref[...] + shift_ref[...], 0.0)
    nb = x_ref.shape[0]
    o_ref[...] = o.reshape(nb, h_out * w_out, o.shape[-1]).astype(o_ref.dtype)


def _finalize_bn(stats, m_tile, m_total, gamma_pad, beta_pad, eps):
    """Chan-style combine of per-tile (sum, centered SSQ) -> BN scale/shift."""
    sums = stats[:, 0, :]
    m2s = stats[:, 1, :]
    total = jnp.sum(sums, axis=0)
    mean = total / m_total
    tile_means = sums / m_tile
    m2 = jnp.sum(m2s, axis=0) + m_tile * jnp.sum((tile_means - mean) ** 2, axis=0)
    var = jnp.maximum(m2 / m_total, 0.0)        # biased var (training-mode BN)
    inv_std = lax.rsqrt(var + eps)
    scale = gamma_pad * inv_std
    shift = beta_pad - mean * scale
    return scale.reshape(1, -1), shift.reshape(1, -1)


def depthwise_conv_block(x_nchw, params, *, stride=1, padding=0, eps=1e-5):
    """Pallas implementation of DepthwiseConvBlock.forward (NCHW in / out)."""
    wdw_t = params["dw_weight"]   # (Cin, 1, K, K)
    bdw = params["dw_bias"]       # (Cin,)
    wpw_t = params["pw_weight"]   # (Cout, Cin, 1, 1)
    bpw = params["pw_bias"]       # (Cout,)
    gamma = params["bn_weight"]   # (Cout,)
    beta = params["bn_bias"]      # (Cout,)

    n, cin, h, w = x_nchw.shape
    k = wdw_t.shape[-1]
    cout = wpw_t.shape[0]
    h_out = (h + 2 * padding - k) // stride + 1
    w_out = (w + 2 * padding - k) // stride + 1
    cpad = ((cout + _LANE - 1) // _LANE) * _LANE          # lane-dense channels

    # --- weights: depthwise taps stay f32 (VPU); pointwise is bf16 (MXU) ----
    wdw = jnp.transpose(wdw_t[:, 0, :, :], (1, 2, 0)).reshape(k * k, cin)
    wdw = wdw.astype(jnp.float32)
    wpw = jnp.transpose(wpw_t[:, :, 0, 0], (1, 0)).astype(jnp.float32)  # (Cin,Cout)
    b_fold = bdw.astype(jnp.float32) @ wpw + bpw.astype(jnp.float32)    # dw bias folded
    wpw_pad = jnp.pad(wpw, ((0, 0), (0, cpad - cout))).astype(jnp.bfloat16)
    b_pad = jnp.pad(b_fold, (0, cpad - cout)).reshape(1, cpad)

    # --- activation: NCHW -> NHWC + spatial zero pad (halo inside the block) -
    # TODO(synk): for images too large for one VMEM block, tile over H-bands
    # with halo'd manual DMA instead of one whole image per grid step.
    x = jnp.transpose(x_nchw, (0, 2, 3, 1)).astype(jnp.float32)
    xp = jnp.pad(x, ((0, 0), (padding, padding), (padding, padding), (0, 0)))
    hp, wp = h + 2 * padding, w + 2 * padding

    rows_per_image = h_out * w_out
    nb = _pick_images_per_tile(n, rows_per_image)
    grid = n // nb
    m_tile = nb * rows_per_image
    m_total = n * rows_per_image

    cparams = pltpu.CompilerParams(
        dimension_semantics=("parallel",),
        vmem_limit_bytes=_vmem_limit_bytes())

    x_spec = pl.BlockSpec((nb, hp, wp, cin), lambda i: (i, 0, 0, 0))
    wdw_spec = pl.BlockSpec((k * k, cin), lambda i: (0, 0))
    wpw_spec = pl.BlockSpec((cin, cpad), lambda i: (0, 0))
    vec_spec = pl.BlockSpec((1, cpad), lambda i: (0, 0))
    conv_kw = dict(k=k, stride=stride, h_out=h_out, w_out=w_out)

    # --- pass 1: per-tile conv (in-register) + packed centered BN stats -----
    stats = pl.pallas_call(
        functools.partial(_conv_stats_kernel, **conv_kw),
        grid=(grid,),
        in_specs=[x_spec, wdw_spec, wpw_spec, vec_spec],
        out_specs=pl.BlockSpec((1, 2, cpad), lambda i: (i, 0, 0)),
        out_shape=jax.ShapeDtypeStruct((grid, 2, cpad), jnp.float32),
        compiler_params=cparams,
    )(xp, wdw, wpw_pad, b_pad)

    # --- finalize batch stats (tiny, in JAX) and fold gamma/beta ------------
    gamma_pad = jnp.pad(gamma.astype(jnp.float32), (0, cpad - cout))
    beta_pad = jnp.pad(beta.astype(jnp.float32), (0, cpad - cout))
    scale, shift = _finalize_bn(stats, m_tile, m_total, gamma_pad, beta_pad, eps)

    # --- pass 2: recompute conv, apply BN + ReLU, write lane-dense output ---
    out_rows = pl.pallas_call(
        functools.partial(_conv_bn_relu_kernel, **conv_kw),
        grid=(grid,),
        in_specs=[x_spec, wdw_spec, wpw_spec, vec_spec, vec_spec, vec_spec],
        out_specs=pl.BlockSpec((nb, rows_per_image, cpad), lambda i: (i, 0, 0)),
        out_shape=jax.ShapeDtypeStruct((n, rows_per_image, cpad), x_nchw.dtype),
        compiler_params=cparams,
    )(xp, wdw, wpw_pad, b_pad, scale, shift)

    out = out_rows[:, :, :cout].reshape(n, h_out, w_out, cout)
    # TODO(synk): consumers that accept NHWC can skip this final relayout; the
    # nn.Module contract is NCHW, so one transpose of the true-Cout output
    # remains (the lane-padded slab is sliced away before the relayout).
    return jnp.transpose(out, (0, 3, 1, 2))
    # TODO(synk): nn.BatchNorm2d also updates running_mean/var as a side
    # effect; that state update has no bearing on the forward output here.


def _reference(x, params, *, stride, padding, eps=1e-5):
    """Pure-JAX reference mirroring the PyTorch forward, for validation."""
    dw = lax.conv_general_dilated(
        x, params["dw_weight"], (stride, stride),
        [(padding, padding), (padding, padding)],
        dimension_numbers=("NCHW", "OIHW", "NCHW"),
        feature_group_count=x.shape[1])
    dw = dw + params["dw_bias"].reshape(1, -1, 1, 1)
    pw = lax.conv_general_dilated(
        dw, params["pw_weight"], (1, 1), [(0, 0), (0, 0)],
        dimension_numbers=("NCHW", "OIHW", "NCHW"))
    pw = pw + params["pw_bias"].reshape(1, -1, 1, 1)
    mean = pw.mean(axis=(0, 2, 3), keepdims=True)
    var = ((pw - mean) ** 2).mean(axis=(0, 2, 3), keepdims=True)
    y = (pw - mean) * lax.rsqrt(var + eps)
    y = y * params["bn_weight"].reshape(1, -1, 1, 1) + params["bn_bias"].reshape(1, -1, 1, 1)
    return jnp.maximum(y, 0.0)


if __name__ == "__main__":
    N, CIN, COUT, H, W, K = 2, 4, 8, 16, 16, 3

    key = jax.random.PRNGKey(0)
    k_x, k_dw, k_bdw, k_pw, k_bpw = jax.random.split(key, 5)

    x = jax.random.normal(k_x, (N, CIN, H, W), jnp.float32)
    params = {
        "dw_weight": 0.2 * jax.random.normal(k_dw, (CIN, 1, K, K), jnp.float32),
        "dw_bias": 0.1 * jax.random.normal(k_bdw, (CIN,), jnp.float32),
        "pw_weight": 0.2 * jax.random.normal(k_pw, (COUT, CIN, 1, 1), jnp.float32),
        "pw_bias": 0.1 * jax.random.normal(k_bpw, (COUT,), jnp.float32),
        "bn_weight": jnp.ones((COUT,), jnp.float32),   # BatchNorm2d default init
        "bn_bias": jnp.zeros((COUT,), jnp.float32),
    }

    # Tolerance relaxed vs the all-f32 version: the pointwise matmul runs with
    # bf16 MXU operands (f32 accumulation), per the perf review.
    TOL = dict(atol=3e-2, rtol=3e-2)

    # Config 1: stride=1, padding=1 (same spatial size).
    out = jax.block_until_ready(depthwise_conv_block(x, params, stride=1, padding=1))
    ref = jax.block_until_ready(_reference(x, params, stride=1, padding=1))
    assert out.shape == (N, COUT, H, W)
    np.testing.assert_allclose(np.asarray(out), np.asarray(ref), **TOL)

    # Config 2: stride=2, padding=1 (exercises the strided in-kernel windows).
    out2 = jax.block_until_ready(depthwise_conv_block(x, params, stride=2, padding=1))
    ref2 = jax.block_until_ready(_reference(x, params, stride=2, padding=1))
    np.testing.assert_allclose(np.asarray(out2), np.asarray(ref2), **TOL)

    print("KERNEL_OK")
</pallas_src>

<mosaic_0001>
module attributes {stable_mosaic.version = 11 : i64} {
  func.func @_conv_stats_kernel(%arg0: i32, %arg1: memref<1x18x18x4xf32, #tpu.memory_space<vmem>>, %arg2: memref<9x4xf32, #tpu.memory_space<vmem>>, %arg3: memref<4x128xbf16, #tpu.memory_space<vmem>>, %arg4: memref<1x128xf32, #tpu.memory_space<vmem>>, %arg5: memref<1x2x128xf32, #tpu.memory_space<vmem>>) attributes {dimension_semantics = [#tpu.dimension_semantics<parallel>], iteration_bounds = array<i64: 2>, scalar_prefetch = 0 : i64, scratch_operands = 0 : i64, tpu.core_type = #tpu.core_type<tc>, window_params = [{transform_indices = @transform_0, window_bounds = array<i64: 1, 18, 18, 4>}, {pipeline_mode = #tpu.pipeline_mode<synchronous>, transform_indices = @transform_1, window_bounds = array<i64: 9, 4>}, {pipeline_mode = #tpu.pipeline_mode<synchronous>, transform_indices = @transform_2, window_bounds = array<i64: 4, 128>}, {pipeline_mode = #tpu.pipeline_mode<synchronous>, transform_indices = @transform_3, window_bounds = array<i64: 1, 128>}, {transform_indices = @transform_4, window_bounds = array<i64: 1, 2, 128>}]} {
    %c0 = arith.constant 0 : index
    %c0_0 = arith.constant 0 : index
    %0 = vector.load %arg2[%c0, %c0_0] : memref<9x4xf32, #tpu.memory_space<vmem>>, vector<9x4xf32>
    %c0_1 = arith.constant 0 : index
    %c0_2 = arith.constant 0 : index
    %c0_3 = arith.constant 0 : index
    %c0_4 = arith.constant 0 : index
    %1 = vector.load %arg1[%c0_1, %c0_2, %c0_3, %c0_4] : memref<1x18x18x4xf32, #tpu.memory_space<vmem>>, vector<1x16x16x4xf32>
    %2 = vector.extract_strided_slice %0 {offsets = [0, 0], sizes = [1, 4], strides = [1, 1]} : vector<9x4xf32> to vector<1x4xf32>
    %3 = vector.shape_cast %2 : vector<1x4xf32> to vector<1x1x1x4xf32>
    %4 = vector.broadcast %3 : vector<1x1x1x4xf32> to vector<1x16x16x4xf32>
    %5 = arith.mulf %1, %4 : vector<1x16x16x4xf32>
    %c0_5 = arith.constant 0 : index
    %c0_6 = arith.constant 0 : index
    %c1 = arith.constant 1 : index
    %c0_7 = arith.constant 0 : index
    %6 = vector.load %arg1[%c0_5, %c0_6, %c1, %c0_7] : memref<1x18x18x4xf32, #tpu.memory_space<vmem>>, vector<1x16x16x4xf32>
    %7 = vector.extract_strided_slice %0 {offsets = [1, 0], sizes = [1, 4], strides = [1, 1]} : vector<9x4xf32> to vector<1x4xf32>
    %8 = vector.shape_cast %7 : vector<1x4xf32> to vector<1x1x1x4xf32>
    %9 = vector.broadcast %8 : vector<1x1x1x4xf32> to vector<1x16x16x4xf32>
    %10 = arith.mulf %6, %9 : vector<1x16x16x4xf32>
    %11 = arith.addf %5, %10 : vector<1x16x16x4xf32>
    %c0_8 = arith.constant 0 : index
    %c0_9 = arith.constant 0 : index
    %c2 = arith.constant 2 : index
    %c0_10 = arith.constant 0 : index
    %12 = vector.load %arg1[%c0_8, %c0_9, %c2, %c0_10] : memref<1x18x18x4xf32, #tpu.memory_space<vmem>>, vector<1x16x16x4xf32>
    %13 = vector.extract_strided_slice %0 {offsets = [2, 0], sizes = [1, 4], strides = [1, 1]} : vector<9x4xf32> to vector<1x4xf32>
    %14 = vector.shape_cast %13 : vector<1x4xf32> to vector<1x1x1x4xf32>
    %15 = vector.broadcast %14 : vector<1x1x1x4xf32> to vector<1x16x16x4xf32>
    %16 = arith.mulf %12, %15 : vector<1x16x16x4xf32>
    %17 = arith.addf %11, %16 : vector<1x16x16x4xf32>
    %c0_11 = arith.constant 0 : index
    %c1_12 = arith.constant 1 : index
    %c0_13 = arith.constant 0 : index
    %c0_14 = arith.constant 0 : index
    %18 = vector.load %arg1[%c0_11, %c1_12, %c0_13, %c0_14] : memref<1x18x18x4xf32, #tpu.memory_space<vmem>>, vector<1x16x16x4xf32>
    %19 = vector.extract_strided_slice %0 {offsets = [3, 0], sizes = [1, 4], strides = [1, 1]} : vector<9x4xf32> to vector<1x4xf32>
    %20 = vector.shape_cast %19 : vector<1x4xf32> to vector<1x1x1x4xf32>
    %21 = vector.broadcast %20 : vector<1x1x1x4xf32> to vector<1x16x16x4xf32>
    %22 = arith.mulf %18, %21 : vector<1x16x16x4xf32>
    %23 = arith.addf %17, %22 : vector<1x16x16x4xf32>
    %c0_15 = arith.constant 0 : index
    %c1_16 = arith.constant 1 : index
    %c1_17 = arith.constant 1 : index
    %c0_18 = arith.constant 0 : index
    %24 = vector.load %arg1[%c0_15, %c1_16, %c1_17, %c0_18] : memref<1x18x18x4xf32, #tpu.memory_space<vmem>>, vector<1x16x16x4xf32>
    %25 = vector.extract_strided_slice %0 {offsets = [4, 0], sizes = [1, 4], strides = [1, 1]} : vector<9x4xf32> to vector<1x4xf32>
    %26 = vector.shape_cast %25 : vector<1x4xf32> to vector<1x1x1x4xf32>
    %27 = vector.broadcast %26 : vector<1x1x1x4xf32> to vector<1x16x16x4xf32>
    %28 = arith.mulf %24, %27 : vector<1x16x16x4xf32>
    %29 = arith.addf %23, %28 : vector<1x16x16x4xf32>
    %c0_19 = arith.constant 0 : index
    %c1_20 = arith.constant 1 : index
    %c2_21 = arith.constant 2 : index
    %c0_22 = arith.constant 0 : index
    %30 = vector.load %arg1[%c0_19, %c1_20, %c2_21, %c0_22] : memref<1x18x18x4xf32, #tpu.memory_space<vmem>>, vector<1x16x16x4xf32>
    %31 = vector.extract_strided_slice %0 {offsets = [5, 0], sizes = [1, 4], strides = [1, 1]} : vector<9x4xf32> to vector<1x4xf32>
    %32 = vector.shape_cast %31 : vector<1x4xf32> to vector<1x1x1x4xf32>
    %33 = vector.broadcast %32 : vector<1x1x1x4xf32> to vector<1x16x16x4xf32>
    %34 = arith.mulf %30, %33 : vector<1x16x16x4xf32>
    %35 = arith.addf %29, %34 : vector<1x16x16x4xf32>
    %c0_23 = arith.constant 0 : index
    %c2_24 = arith.constant 2 : index
    %c0_25 = arith.constant 0 : index
    %c0_26 = arith.constant 0 : index
    %36 = vector.load %arg1[%c0_23, %c2_24, %c0_25, %c0_26] : memref<1x18x18x4xf32, #tpu.memory_space<vmem>>, vector<1x16x16x4xf32>
    %37 = vector.extract_strided_slice %0 {offsets = [6, 0], sizes = [1, 4], strides = [1, 1]} : vector<9x4xf32> to vector<1x4xf32>
    %38 = vector.shape_cast %37 : vector<1x4xf32> to vector<1x1x1x4xf32>
    %39 = vector.broadcast %38 : vector<1x1x1x4xf32> to vector<1x16x16x4xf32>
    %40 = arith.mulf %36, %39 : vector<1x16x16x4xf32>
    %41 = arith.addf %35, %40 : vector<1x16x16x4xf32>
    %c0_27 = arith.constant 0 : index
    %c2_28 = arith.constant 2 : index
    %c1_29 = arith.constant 1 : index
    %c0_30 = arith.constant 0 : index
    %42 = vector.load %arg1[%c0_27, %c2_28, %c1_29, %c0_30] : memref<1x18x18x4xf32, #tpu.memory_space<vmem>>, vector<1x16x16x4xf32>
    %43 = vector.extract_strided_slice %0 {offsets = [7, 0], sizes = [1, 4], strides = [1, 1]} : vector<9x4xf32> to vector<1x4xf32>
    %44 = vector.shape_cast %43 : vector<1x4xf32> to vector<1x1x1x4xf32>
    %45 = vector.broadcast %44 : vector<1x1x1x4xf32> to vector<1x16x16x4xf32>
    %46 = arith.mulf %42, %45 : vector<1x16x16x4xf32>
    %47 = arith.addf %41, %46 : vector<1x16x16x4xf32>
    %c0_31 = arith.constant 0 : index
    %c2_32 = arith.constant 2 : index
    %c2_33 = arith.constant 2 : index
    %c0_34 = arith.constant 0 : index
    %48 = vector.load %arg1[%c0_31, %c2_32, %c2_33, %c0_34] : memref<1x18x18x4xf32, #tpu.memory_space<vmem>>, vector<1x16x16x4xf32>
    %49 = vector.extract_strided_slice %0 {offsets = [8, 0], sizes = [1, 4], strides = [1, 1]} : vector<9x4xf32> to vector<1x4xf32>
    %50 = vector.shape_cast %49 : vector<1x4xf32> to vector<1x1x1x4xf32>
    %51 = vector.broadcast %50 : vector<1x1x1x4xf32> to vector<1x16x16x4xf32>
    %52 = arith.mulf %48, %51 : vector<1x16x16x4xf32>
    %53 = arith.addf %47, %52 : vector<1x16x16x4xf32>
    %54 = vector.shape_cast %53 : vector<1x16x16x4xf32> to vector<256x4xf32>
    %55 = arith.truncf %54 : vector<256x4xf32> to vector<256x4xbf16>
    %c0_35 = arith.constant 0 : index
    %c0_36 = arith.constant 0 : index
    %56 = vector.load %arg3[%c0_35, %c0_36] : memref<4x128xbf16, #tpu.memory_space<vmem>>, vector<4x128xbf16>
    %cst = arith.constant dense<0.000000e+00> : vector<256x128xf32>
    %57 = tpu.matmul %55, %56, %cst {dimension_numbers = #tpu.dot_dimension_numbers<[1], [0], [0], [1], [0, 0, 1, 1], [], []>} : vector<256x4xbf16>, vector<4x128xbf16>, vector<256x128xf32> -> vector<256x128xf32>
    %c0_37 = arith.constant 0 : index
    %c0_38 = arith.constant 0 : index
    %58 = vector.load %arg4[%c0_37, %c0_38] : memref<1x128xf32, #tpu.memory_space<vmem>>, vector<1x128xf32>
    %59 = vector.broadcast %58 : vector<1x128xf32> to vector<256x128xf32>
    %60 = arith.addf %57, %59 : vector<256x128xf32>
    %cst_39 = arith.constant dense<0.000000e+00> : vector<128xf32>
    %61 = vector.multi_reduction <add>, %60, %cst_39 [0] : vector<256x128xf32> to vector<128xf32>
    %62 = vector.shape_cast %61 : vector<128xf32> to vector<1x128xf32>
    %cst_40 = arith.constant 3.906250e-03 : f32
    %63 = vector.broadcast %cst_40 : f32 to vector<1x128xf32>
    %64 = arith.mulf %62, %63 : vector<1x128xf32>
    %65 = vector.broadcast %64 : vector<1x128xf32> to vector<256x128xf32>
    %66 = arith.subf %60, %65 : vector<256x128xf32>
    %67 = arith.mulf %66, %66 : vector<256x128xf32>
    %cst_41 = arith.constant dense<0.000000e+00> : vector<128xf32>
    %68 = vector.multi_reduction <add>, %67, %cst_41 [0] : vector<256x128xf32> to vector<128xf32>
    %69 = vector.shape_cast %68 : vector<128xf32> to vector<1x128xf32>
    %70 = tpu.concatenate %62, %69 in 0 : vector<1x128xf32>, vector<1x128xf32> -> vector<2x128xf32>
    %71 = vector.shape_cast %70 : vector<2x128xf32> to vector<1x2x128xf32>
    %c0_42 = arith.constant 0 : index
    %c0_43 = arith.constant 0 : index
    %c0_44 = arith.constant 0 : index
    %72 = vector.load %arg5[%c0_42, %c0_43, %c0_44] : memref<1x2x128xf32, #tpu.memory_space<vmem>>, vector<1x2x128xf32>
    tpu.vector_store %arg5[%c0_42, %c0_43, %c0_44], %71 {strides = array<i32>} : memref<1x2x128xf32, #tpu.memory_space<vmem>>, vector<1x2x128xf32>,
    return
  }
  func.func @transform_0(%arg0: i32) -> (i32, i32, i32, i32) {
    %c0_i32 = arith.constant 0 : i32
    %c0_i32_0 = arith.constant 0 : i32
    %c0_i32_1 = arith.constant 0 : i32
    %c0_i32_2 = arith.constant 0 : i32
    return %arg0, %c0_i32, %c0_i32_0, %c0_i32_1 : i32, i32, i32, i32
  }
  func.func @transform_1(%arg0: i32) -> (i32, i32) {
    %c0_i32 = arith.constant 0 : i32
    %c0_i32_0 = arith.constant 0 : i32
    %c0_i32_1 = arith.constant 0 : i32
    return %c0_i32, %c0_i32_0 : i32, i32
  }
  func.func @transform_2(%arg0: i32) -> (i32, i32) {
    %c0_i32 = arith.constant 0 : i32
    %c0_i32_0 = arith.constant 0 : i32
    %c0_i32_1 = arith.constant 0 : i32
    return %c0_i32, %c0_i32_0 : i32, i32
  }
  func.func @transform_3(%arg0: i32) -> (i32, i32) {
    %c0_i32 = arith.constant 0 : i32
    %c0_i32_0 = arith.constant 0 : i32
    %c0_i32_1 = arith.constant 0 : i32
    return %c0_i32, %c0_i32_0 : i32, i32
  }
  func.func @transform_4(%arg0: i32) -> (i32, i32, i32) {
    %c0_i32 = arith.constant 0 : i32
    %c0_i32_0 = arith.constant 0 : i32
    %c0_i32_1 = arith.constant 0 : i32
    return %arg0, %c0_i32, %c0_i32_0 : i32, i32, i32
  }
}

</mosaic_0001>

<bundles_post_ra>
// kernel: tpu_custom_call.1
= control target key start
LH: loop header
LB: loop body
LE: loop exit
PB: predicated region body
PF: predicated region fallthrough
CT: control target
= control target key end

     0   :  { %9 = vsyncpa [#allocation3], 0  ;;  %s2697_s0 = inlined_call_operand.vmem [shape: f32[2,18,18,4], index: 0, kind: input, shape index: {}]   ;;  %s2698_s1 = inlined_call_operand.vmem [shape: f32[9,4], index: 1, kind: input, shape index: {}]   ;;  %s2699_s2 = inlined_call_operand.vmem [shape: bf16[4,128], index: 2, kind: input, shape index: {}]   ;;  %s2700_s3 = inlined_call_operand.vmem [shape: f32[1,128], index: 3, kind: input, shape index: {}]   ;;  %s2701_s4 = inlined_call_operand.hbm [shape: f32[2,2,128], index: 4, kind: output, shape index: {}]  }
   0x1   :  { %11 = vsyncpa [#allocation3 + $0x1], 0  ;;  %s1928_s15 = smov 0   ;;  %s1930_s16 = smov 0  }
   0x2   :  { %s1932_s17 = smov 0   ;;  %s1934_s18 = smov 0  }
   0x3 LB: > { %s1949_s19 = sadd.s32 4294967295, %s1900_s18   ;;  %s1522_s20 = sadd.s32 4294967294, %s1900_s18   ;;  %s1900_s18 = sphi %s1934_s18, %s2707_s18   ;;  %s1896_s17 = sphi %s1932_s17, %s2706_s17   ;;  %s1892_s16 = sphi %s1930_s16, %s2705_s16   ;;  %s1888_s15 = sphi %s1928_s15, %s2704_s15  }
   0x4   : > { %s1953_s21 = sadd.s32 1, %s1900_s18   ;;  %s113_s22 = sadd.s32 1, %s1896_s17 }
   0x5   : > { %s110_s23 = ssub.s32 %s1900_s18, %s1953_s21  ;;  %p123_p0 = scmp.ne.s32.totalorder %s1896_s17, %s1892_s16 }
   0x6   : > { %p111_p1 = scmp.eq.s32.totalorder %s110_s23, 0  ;;  %p124_p2 = scmp.eq.s32.totalorder %s1949_s19, 1 }
   0x7   : > { %p129_p3 = scmp.ne.s32.totalorder %s1892_s16, %s1888_s15  ;;  %p130_p4 = scmp.eq.s32.totalorder %s1522_s20, 1 }
   0x8   : > { %s1964_s24 = scalar_select %p111_p1, %s1896_s17, %s113_s22  }
   0x9   : > { %p1966_p5 = por %p124_p2, %p123_p0  ;;  %p1970_p6 = por %p130_p4, %p129_p3 }
   0xa   : > { %p1525_p7 = scmp.ge.s32.totalorder %s1900_s18, 1  ;;  %p165_p8 = scmp.lt.s32.totalorder %s1900_s18, 3 }
   0xc   : > { %p166_p9 = pnand %p1525_p7, %p165_p8 }
   0xd   : > { %v1085_v0 = vld [vmem:[%s2699_s2] sm:$0x3] (!%p166_p9)  ;;  %vm1142_vm0 = vcmask (!%p166_p9), 1041408   ;;  %p191_p10 = scmp.lt.s32.totalorder (!%p166_p9), %s1949_s19, 1  ;;  %v231_v1 = vlaneseq (!%p166_p9)  ;;  %v2009_v23 = vld [vmem:[%s2698_s1 + $0x8] ss:$0 sm:$0xff] (!%p166_p9) }
   0xe   : > { %169 = sbr.rel (%p166_p9) target bundleno = 506 (0x1fa), region = 36  ;;  %1795 = vmatprep.subr.msk.bf16.mxu0 (!%p166_p9), %vm1142_vm0, %v1085_v0  ;;  %v1144_v2 = vsel (!%p166_p9), %vm1142_vm0, %v1085_v0, 0  ;;  %1796 = vmatprep.subr.msk.bf16.mxu1 (!%p166_p9), %vm1142_vm0, %v1085_v0  ;;  %v197_v4 = vld [vmem:[%s2698_s1] sm:$0xff] (!%p166_p9)  ;;  %vm1093_vm1 = vcmask (!%p166_p9), 31744   ;;  %s188_s22 = sand.u32 (!%p166_p9), 1, %s1892_s16   ;;  %vm1446_vm2 = vcmask (!%p166_p9), 1040384  }
   0xf   : > { %1760 = vmatpush3.bf16.msra.mxu0 (!%p166_p9), %v1144_v2  ;;  %v232_v3 = vshrl.u32 (!%p166_p9), %v231_v1, 7  ;;  %1794 = vmatpush3.bf16.msra.mxu1 (!%p166_p9), %v1144_v2  ;;  %s1526_s23 = sshll.u32 (!%p166_p9), %s188_s22, 1  ;;  %s1739_s27 = sshll.u32 (!%p166_p9), %s1949_s19, 5 }
  0x10   : > { %s190_s28 = scalar_lea.vmem (!%p166_p9), [#allocation2], %s1526_s23  ;;  %s1450_s7 = scalar_lea.sflag (!%p166_p9), [#allocation3], %s188_s22 }
  0x11   : > { %v233_v5 = vsub.s32 (!%p166_p9), 0, %v232_v3  ;;  %v301_v6 = vsub.s32 (!%p166_p9), 1, %v232_v3  ;;  %v401_v7 = vsub.s32 (!%p166_p9), 2, %v232_v3  ;;  %v502_v8 = vsub.s32 (!%p166_p9), 3, %v232_v3 }
  0x12   : > { %v602_v9 = vsub.s32 (!%p166_p9), 4, %v232_v3  ;;  %v702_v10 = vsub.s32 (!%p166_p9), 5, %v232_v3  ;;  %v803_v11 = vsub.s32 (!%p166_p9), 6, %v232_v3  ;;  %v903_v12 = vsub.s32 (!%p166_p9), 7, %v232_v3 }
  0x13   : > { %v1989_v13 = vrot.slane (!%p166_p9), %v197_v4, %v233_v5  ;;  %v1991_v14 = vrot.slane (!%p166_p9), %v197_v4, %v301_v6  ;;  %v1993_v15 = vrot.slane (!%p166_p9), %v197_v4, %v401_v7  ;;  %v1995_v16 = vrot.slane (!%p166_p9), %v197_v4, %v502_v8 }
  0x14   : > { %v2000_v20 = vrot.slane (!%p166_p9), %v197_v4, %v602_v9  ;;  %v2002_v21 = vrot.slane (!%p166_p9), %v197_v4, %v702_v10  ;;  %v2004_v22 = vrot.slane (!%p166_p9), %v197_v4, %v803_v11  ;;  %v2017_v30 = vrot.slane (!%p166_p9), %v197_v4, %v903_v12 }
  0x15   : > { %s192_s29 = scalar_select %p191_p10, %s1949_s19, 1 }
  0x16   : > { %s1902_s19 = smov [#allocation2]  }
  0x17   : > { %s1797_s6 = smul.u32 432, %s192_s29  ;;  %s1463_s29 = sshll.u32 %s190_s28, 4  ;;  %s2656_s29 = int_to_ptr.vmem [resolvable:$true] %s1463_s29 }
  0x18   : > { %s1838_s8 = scalar_lea.vmem %s2656_s29, 32 }
  0x19   : > { %s1987_s9 = scalar_lea.vmem %s2697_s0, %s1797_s6  ;;  %s2654_s6 = scalar_lea.hbm %s2701_s4, %s1739_s27 }
  0x1a   : > { %v199_v17 = vld [vmem:[%s1987_s9] sm:$0xff]  ;;  %v200_v18 = vld [vmem:[%s1987_s9 + $0x8] sm:$0xff]  ;;  %v1528_v34 = vld [vmem:[%s1987_s9 + $0x18] sm:$0xff]  ;;  %p1839_p11 = scmp.ne.s32.totalorder %s2656_s29, %s1838_s8 }
  0x1b   : > { %v267_v19 = vld [vmem:[%s1987_s9 + $0x1] sm:$0xff]  ;;  %v235_v24 = vmul.f32 %v1989_v13, %v199_v17  ;;  %v236_v25 = vmul.f32 %v1989_v13, %v200_v18  ;;  %v268_v26 = vld [vmem:[%s1987_s9 + $0x9] sm:$0xff]  ;;  %v1560_v36 = vld [vmem:[%s1987_s9 + $0x19] sm:$0xff]  ;;  %v504_v38 = vmul.f32 %v1528_v34, %v1995_v16  ;;  %v237_v63 = vmul.f32 %v1528_v34, %v1989_v13 }
  0x1c   : > { %v303_v27 = vmul.f32 %v1991_v14, %v267_v19  ;;  %v367_v28 = vld [vmem:[%s1987_s9 + $0x2] sm:$0xff]  ;;  %v368_v29 = vld [vmem:[%s1987_s9 + $0xa] sm:$0xff]  ;;  %v304_v31 = vmul.f32 %v1991_v14, %v268_v26  ;;  %v604_v41 = vmul.f32 %v1560_v36, %v2000_v20  ;;  %v1592_v42 = vld [vmem:[%s1987_s9 + $0x1a] sm:$0xff]  ;;  %v305_v1 = vmul.f32 %v1560_v36, %v1991_v14  ;;  %p1840_p12 = pnand %p1839_p11, %p1966_p5 }
  0x1d   : > { %v403_v32 = vmul.f32 %v1993_v15, %v367_v28  ;;  %v404_v33 = vmul.f32 %v1993_v15, %v368_v29  ;;  %v1529_v35 = vld [vmem:[%s1987_s9 + $0x20] sm:$0xff]  ;;  %v704_v46 = vmul.f32 %v1592_v42, %v2002_v21  ;;  %v1624_v48 = vld [vmem:[%s1987_s9 + $0x30] sm:$0xff]  ;;  %v1625_v49 = vld [vmem:[%s1987_s9 + $0x38] sm:$0xff]  ;;  %v405_v4 = vmul.f32 %v1592_v42, %v1993_v15 }
  0x1e   : > { %v335_v37 = vadd.f32 %v303_v27, %v235_v24  ;;  %v505_v39 = vmul.f32 %v1529_v35, %v1995_v16  ;;  %v1561_v40 = vld [vmem:[%s1987_s9 + $0x21] sm:$0xff]  ;;  %v336_v44 = vadd.f32 %v304_v31, %v236_v25  ;;  %v1656_v50 = vld [vmem:[%s1987_s9 + $0x31] sm:$0xff]  ;;  %v805_v52 = vmul.f32 %v1624_v48, %v2004_v22  ;;  %v1657_v54 = vld [vmem:[%s1987_s9 + $0x39] sm:$0xff]  ;;  %p1841_p13 = pneg %p1840_p12 }
  0x1f   : > { %v1593_v43 = vld [vmem:[%s1987_s9 + $0x22] sm:$0xff]  ;;  %v605_v45 = vmul.f32 %v1561_v40, %v2000_v20  ;;  %v806_v53 = vmul.f32 %v1625_v49, %v2004_v22  ;;  %v905_v55 = vmul.f32 %v1656_v50, %v2017_v30  ;;  %v1688_v56 = vld [vmem:[%s1987_s9 + $0x32] sm:$0xff]  ;;  %v1689_v57 = vld [vmem:[%s1987_s9 + $0x3a] sm:$0xff]  ;;  %v906_v59 = vmul.f32 %v1657_v54, %v2017_v30 }
  0x20   : > { %v705_v47 = vmul.f32 %v1593_v43, %v2002_v21  ;;  %v435_v51 = vadd.f32 %v403_v32, %v335_v37  ;;  %v436_v58 = vadd.f32 %v404_v33, %v336_v44  ;;  %v1005_v60 = vmul.f32 %v2009_v23, %v1688_v56  ;;  %v2059_v26 = vld [vmem:[%s1987_s9 + $0x48] sm:$0xff]  ;;  %v2062_v27 = vld [vmem:[%s1987_s9 + $0x50] sm:$0xff] }
  0x21   : > { %v1006_v61 = vmul.f32 %v2009_v23, %v1689_v57  ;;  %v238_v0 = vmul.f32 %v1529_v35, %v1989_v13  ;;  %v306_v3 = vmul.f32 %v1561_v40, %v1991_v14  ;;  %v406_v5 = vmul.f32 %v1593_v43, %v1993_v15  ;;  %v1658_v33 = vld [vmem:[%s1987_s9 + $0x49] sm:$0xff]  ;;  %v2070_v34 = vld [vmem:[%s1987_s9 + $0x51] sm:$0xff] }
  0x22   : > { %v536_v62 = vadd.f32 %v504_v38, %v435_v51  ;;  %v537_v2 = vadd.f32 %v505_v39, %v436_v58  ;;  %v337_v7 = vadd.f32 %v305_v1, %v237_v63  ;;  %v506_v8 = vmul.f32 %v1624_v48, %v1995_v16  ;;  %v1690_v39 = vld [vmem:[%s1987_s9 + $0x4a] sm:$0xff]  ;;  %v1691_v40 = vld [vmem:[%s1987_s9 + $0x52] sm:$0xff] }
  0x23   : > { %v507_v9 = vmul.f32 %v1625_v49, %v1995_v16  ;;  %v338_v11 = vadd.f32 %v306_v3, %v238_v0  ;;  %v606_v12 = vmul.f32 %v1656_v50, %v2000_v20  ;;  %v607_v17 = vmul.f32 %v1657_v54, %v2000_v20 }
  0x24   : > { %v636_v6 = vadd.f32 %v604_v41, %v536_v62  ;;  %v637_v10 = vadd.f32 %v605_v45, %v537_v2  ;;  %v437_v19 = vadd.f32 %v405_v4, %v337_v7  ;;  %v706_v24 = vmul.f32 %v1688_v56, %v2002_v21 }
  0x25   : > { %v707_v25 = vmul.f32 %v1689_v57, %v2002_v21  ;;  %v438_v29 = vadd.f32 %v406_v5, %v338_v11  ;;  %v807_v31 = vmul.f32 %v2059_v26, %v2004_v22  ;;  %v808_v32 = vmul.f32 %v2062_v27, %v2004_v22 }
  0x26   : > { %v736_v18 = vadd.f32 %v704_v46, %v636_v6  ;;  %v737_v28 = vadd.f32 %v705_v47, %v637_v10  ;;  %v538_v36 = vadd.f32 %v506_v8, %v437_v19  ;;  %v907_v37 = vmul.f32 %v1658_v33, %v2017_v30  ;;  %v1660_v19 = vld [vmem:[%s1987_s9 + $0x61] sm:$0xff] }
  0x27   : > { %v908_v38 = vmul.f32 %v2070_v34, %v2017_v30  ;;  %v539_v42 = vadd.f32 %v507_v9, %v438_v29  ;;  %v1007_v43 = vmul.f32 %v2009_v23, %v1690_v39  ;;  %v1008_v44 = vmul.f32 %v2009_v23, %v1691_v40  ;;  %v1628_v9 = vld [vmem:[%s1987_s9 + $0x60] sm:$0xff] }
  0x28   : > { %v837_v35 = vadd.f32 %v805_v52, %v736_v18  ;;  %v838_v41 = vadd.f32 %v806_v53, %v737_v28  ;;  %v638_v46 = vadd.f32 %v606_v12, %v538_v36  ;;  %v239_v47 = vmul.f32 %v1624_v48, %v1989_v13 }
  0x29   : > { %v240_v51 = vmul.f32 %v1625_v49, %v1989_v13  ;;  %v639_v58 = vadd.f32 %v607_v17, %v539_v42  ;;  %v307_v62 = vmul.f32 %v1656_v50, %v1991_v14  ;;  %v308_v63 = vmul.f32 %v1657_v54, %v1991_v14  ;;  %v1629_v17 = vld [vmem:[%s1987_s9 + $0x68] sm:$0xff] }
  0x2a   : > { %v937_v45 = vadd.f32 %v905_v55, %v837_v35  ;;  %v938_v52 = vadd.f32 %v906_v59, %v838_v41  ;;  %v738_v1 = vadd.f32 %v706_v24, %v638_v46  ;;  %v407_v53 = vmul.f32 %v1688_v56, %v1993_v15  ;;  %v1661_v24 = vld [vmem:[%s1987_s9 + $0x69] sm:$0xff] }
  0x2b   : > { %v408_v2 = vmul.f32 %v1689_v57, %v1993_v15  ;;  %v739_v55 = vadd.f32 %v707_v25, %v639_v58  ;;  %v339_v4 = vadd.f32 %v307_v62, %v239_v47  ;;  %v340_v5 = vadd.f32 %v308_v63, %v240_v51  ;;  %v1693_v41 = vld [vmem:[%s1987_s9 + $0x6a] sm:$0xff] }
  0x2c   : > { %v1037_v0 = vadd.f32 %v1005_v60, %v937_v45  ;;  %v1038_v3 = vadd.f32 %v1006_v61, %v938_v52  ;;  %v839_v48 = vadd.f32 %v807_v31, %v738_v1  ;;  %v508_v49 = vmul.f32 %v2059_v26, %v1995_v16 }
  0x2d   : > { %v509_v50 = vmul.f32 %v2062_v27, %v1995_v16  ;;  %v608_v54 = vmul.f32 %v1658_v33, %v2000_v20  ;;  %v840_v56 = vadd.f32 %v808_v32, %v739_v55  ;;  %v439_v57 = vadd.f32 %v407_v53, %v339_v4  ;;  %v1692_v32 = vld [vmem:[%s1987_s9 + $0x62] sm:$0xff]  ;;  %v1630_v4 = vld [vmem:[%s1987_s9 + $0x78] sm:$0xff] }
  0x2e   : > { %v1069_v59 = vpack.c.bf16 %v1038_v3, %v1037_v0  ;;  %v440_v60 = vadd.f32 %v408_v2, %v340_v5  ;;  %v939_v61 = vadd.f32 %v907_v37, %v839_v48  ;;  %v609_v6 = vmul.f32 %v2070_v34, %v2000_v20  ;;  %v1631_v5 = vld [vmem:[%s1987_s9 + $0x80] sm:$0xff] }
  0x2f   : > { %v708_v7 = vmul.f32 %v1690_v39, %v2002_v21  ;;  %v709_v8 = vmul.f32 %v1691_v40, %v2002_v21  ;;  %v940_v10 = vadd.f32 %v908_v38, %v840_v56  ;;  %v540_v11 = vadd.f32 %v508_v49, %v439_v57 }
  0x30   : > { %1761 = vmatprep.mubr.msk.bf16.mxu0 %vm1093_vm1, %v1069_v59  ;;  %v541_v12 = vadd.f32 %v509_v50, %v440_v60  ;;  %v809_v18 = vmul.f32 %v1628_v9, %v2004_v22  ;;  %v1039_v25 = vadd.f32 %v1007_v43, %v939_v61  ;;  %v810_v28 = vmul.f32 %v1629_v17, %v2004_v22  ;;  %v1662_v59 = vld [vmem:[%s1987_s9 + $0x79] sm:$0xff]  ;;  %v1663_v61 = vld [vmem:[%s1987_s9 + $0x81] sm:$0xff] }
  0x31   : > { %v909_v29 = vmul.f32 %v1660_v19, %v2017_v30  ;;  %v910_v31 = vmul.f32 %v1661_v24, %v2017_v30  ;;  %v1040_v35 = vadd.f32 %v1008_v44, %v940_v10  ;;  %v640_v36 = vadd.f32 %v608_v54, %v540_v11 }
  0x32   : > { %v641_v37 = vadd.f32 %v609_v6, %v541_v12  ;;  %v1009_v38 = vmul.f32 %v2009_v23, %v1692_v32  ;;  %v1010_v42 = vmul.f32 %v2009_v23, %v1693_v41  ;;  %v241_v45 = vmul.f32 %v2059_v26, %v1989_v13 }
  0x33   : > { %v242_v43 = vmul.f32 %v2062_v27, %v1989_v13  ;;  %v309_v46 = vmul.f32 %v1658_v33, %v1991_v14  ;;  %v1070_v47 = vpack.c.bf16 %v1040_v35, %v1039_v25  ;;  %v740_v51 = vadd.f32 %v708_v7, %v640_v36  ;;  %v1694_v7 = vld [vmem:[%s1987_s9 + $0x7a] sm:$0xff]  ;;  %v1695_v35 = vld [vmem:[%s1987_s9 + $0x82] sm:$0xff] }
  0x34   : > { %v741_v52 = vadd.f32 %v709_v8, %v641_v37  ;;  %v310_v44 = vmul.f32 %v2070_v34, %v1991_v14  ;;  %v409_v62 = vmul.f32 %v1690_v39, %v1993_v15  ;;  %v410_v63 = vmul.f32 %v1691_v40, %v1993_v15 }
  0x35   : > { %v341_v58 = vadd.f32 %v309_v46, %v241_v45  ;;  %v510_v26 = vmul.f32 %v1628_v9, %v1995_v16  ;;  %1762 = vmatmul.mubr.msk.bf16.vlgmr.msra.gmra.mrb[0].mxu0 %vm1093_vm1, %v1070_v47  ;;  %v841_v27 = vadd.f32 %v809_v18, %v740_v51  ;;  %v511_v1 = vmul.f32 %v1629_v17, %v1995_v16 }
  0x36   : > { %v842_v0 = vadd.f32 %v810_v28, %v741_v52  ;;  %v342_v33 = vadd.f32 %v310_v44, %v242_v43  ;;  %v610_v34 = vmul.f32 %v1660_v19, %v2000_v20  ;;  %v611_v2 = vmul.f32 %v1661_v24, %v2000_v20  ;;  %v1632_v52 = vld [vmem:[%s1987_s9 + $0x90] sm:$0xff] }
  0x37   : > { %v441_v53 = vadd.f32 %v409_v62, %v341_v58  ;;  %v941_v39 = vadd.f32 %v909_v29, %v841_v27  ;;  %v710_v55 = vmul.f32 %v1692_v32, %v2002_v21  ;;  %v711_v49 = vmul.f32 %v1693_v41, %v2002_v21  ;;  %v1664_v27 = vld [vmem:[%s1987_s9 + $0x91] sm:$0xff] }
  0x38   : > { %v942_v3 = vadd.f32 %v910_v31, %v842_v0  ;;  %v442_v40 = vadd.f32 %v410_v63, %v342_v33  ;;  %v811_v50 = vmul.f32 %v1630_v4, %v2004_v22  ;;  %v812_v54 = vmul.f32 %v1631_v5, %v2004_v22  ;;  %v1633_v63 = vld [vmem:[%s1987_s9 + $0x98] sm:$0xff] }
  0x39   : > { %v542_v48 = vadd.f32 %v510_v26, %v441_v53  ;;  %v1041_v56 = vadd.f32 %v1009_v38, %v941_v39  ;;  %v911_v6 = vmul.f32 %v1662_v59, %v2017_v30  ;;  %v912_v10 = vmul.f32 %v1663_v61, %v2017_v30  ;;  %v1665_v53 = vld [vmem:[%s1987_s9 + $0x99] sm:$0xff] }
  0x3a   : > { %v1042_v57 = vadd.f32 %v1010_v42, %v942_v3  ;;  %v543_v60 = vadd.f32 %v511_v1, %v442_v40  ;;  %v1011_v11 = vmul.f32 %v2009_v23, %v1694_v7  ;;  %v243_v12 = vmul.f32 %v1628_v9, %v1989_v13 }
  0x3b   : > { %v642_v8 = vadd.f32 %v610_v34, %v542_v48  ;;  %v244_v28 = vmul.f32 %v1629_v17, %v1989_v13  ;;  %v311_v29 = vmul.f32 %v1660_v19, %v1991_v14  ;;  %v312_v36 = vmul.f32 %v1661_v24, %v1991_v14 }
  0x3c   : > { %v1071_v18 = vpack.c.bf16 %v1042_v57, %v1041_v56  ;;  %v643_v25 = vadd.f32 %v611_v2, %v543_v60  ;;  %v411_v37 = vmul.f32 %v1692_v32, %v1993_v15  ;;  %v412_v38 = vmul.f32 %v1693_v41, %v1993_v15  ;;  %v1696_v2 = vld [vmem:[%s1987_s9 + $0x92] sm:$0xff] }
  0x3d   : > { %v742_v31 = vadd.f32 %v710_v55, %v642_v8  ;;  %v1012_v9 = vmul.f32 %v2009_v23, %v1695_v35  ;;  %v343_v45 = vadd.f32 %v311_v29, %v243_v12  ;;  %v512_v17 = vmul.f32 %v1630_v4, %v1995_v16 }
  0x3e   : > { %1765 = vmatprep.mubr.msk.bf16.mxu0 %vm1093_vm1, %v1071_v18  ;;  %v743_v42 = vadd.f32 %v711_v49, %v643_v25  ;;  %v344_v43 = vadd.f32 %v312_v36, %v244_v28  ;;  %v513_v46 = vmul.f32 %v1631_v5, %v1995_v16  ;;  %v612_v24 = vmul.f32 %v1662_v59, %v2000_v20  ;;  %v1697_v25 = vld [vmem:[%s1987_s9 + $0x9a] sm:$0xff] }
  0x3f   : > { %v843_v19 = vadd.f32 %v811_v50, %v742_v31  ;;  %v443_v41 = vadd.f32 %v411_v37, %v343_v45  ;;  %v613_v47 = vmul.f32 %v1663_v61, %v2000_v20  ;;  %v712_v51 = vmul.f32 %v1694_v7, %v2002_v21 }
  0x40   : > { %v844_v32 = vadd.f32 %v812_v54, %v743_v42  ;;  %v444_v58 = vadd.f32 %v412_v38, %v344_v43  ;;  %v713_v62 = vmul.f32 %v1695_v35, %v2002_v21  ;;  %v813_v26 = vmul.f32 %v1632_v52, %v2004_v22  ;;  %v1634_v38 = vld [vmem:[%s1987_s9 + $0xa8] sm:$0xff]  ;;  %v1635_v42 = vld [vmem:[%s1987_s9 + $0xb0] sm:$0xff] }
  0x41   : > { %v943_v44 = vadd.f32 %v911_v6, %v843_v19  ;;  %v544_v33 = vadd.f32 %v512_v17, %v443_v41  ;;  %v814_v1 = vmul.f32 %v1633_v63, %v2004_v22  ;;  %v913_v34 = vmul.f32 %v1664_v27, %v2017_v30  ;;  %v1666_v43 = vld [vmem:[%s1987_s9 + $0xa9] sm:$0xff]  ;;  %v1667_v41 = vld [vmem:[%s1987_s9 + $0xb1] sm:$0xff] }
  0x42   : > { %v944_v0 = vadd.f32 %v912_v10, %v844_v32  ;;  %v545_v3 = vadd.f32 %v513_v46, %v444_v58  ;;  %v914_v40 = vmul.f32 %v1665_v53, %v2017_v30  ;;  %v1013_v55 = vmul.f32 %v2009_v23, %v1696_v2 }
  0x43   : > { %v1043_v39 = vadd.f32 %v1011_v11, %v943_v44  ;;  %v644_v49 = vadd.f32 %v612_v24, %v544_v33  ;;  %v245_v50 = vmul.f32 %v1630_v4, %v1989_v13  ;;  %v246_v54 = vmul.f32 %v1631_v5, %v1989_v13 }
  0x44   : > { %v1044_v48 = vadd.f32 %v1012_v9, %v944_v0  ;;  %v645_v56 = vadd.f32 %v613_v47, %v545_v3  ;;  %v313_v57 = vmul.f32 %v1662_v59, %v1991_v14  ;;  %v314_v60 = vmul.f32 %v1663_v61, %v1991_v14 }
  0x45   : > { %v413_v6 = vmul.f32 %v1694_v7, %v1993_v15  ;;  %v744_v10 = vadd.f32 %v712_v51, %v644_v49  ;;  %v414_v11 = vmul.f32 %v1695_v35, %v1993_v15  ;;  %v514_v12 = vmul.f32 %v1632_v52, %v1995_v16  ;;  %v1698_v51 = vld [vmem:[%s1987_s9 + $0xaa] sm:$0xff] }
  0x46   : > { %v1072_v8 = vpack.c.bf16 %v1044_v48, %v1043_v39  ;;  %v745_v18 = vadd.f32 %v713_v62, %v645_v56  ;;  %v345_v4 = vadd.f32 %v313_v57, %v245_v50  ;;  %v346_v28 = vadd.f32 %v314_v60, %v246_v54  ;;  %v1699_v39 = vld [vmem:[%s1987_s9 + $0xb2] sm:$0xff] }
  0x47   : > { %v515_v5 = vmul.f32 %v1633_v63, %v1995_v16  ;;  %v845_v59 = vadd.f32 %v813_v26, %v744_v10  ;;  %v1014_v61 = vmul.f32 %v2009_v23, %v1697_v25  ;;  %v614_v7 = vmul.f32 %v1664_v27, %v2000_v20 }
  0x48   : > { %1766 = vmatmul.mubr.msk.bf16.gmra.mrb[4].mxu0 %vm1093_vm1, %v1072_v8  ;;  %v615_v29 = vmul.f32 %v1665_v53, %v2000_v20  ;;  %v846_v31 = vadd.f32 %v814_v1, %v745_v18  ;;  %v445_v35 = vadd.f32 %v413_v6, %v345_v4  ;;  %v446_v36 = vadd.f32 %v414_v11, %v346_v28  ;;  %v1636_v18 = vld [vmem:[%s1987_s9 + $0xc0] sm:$0xff] }
  0x49   : > { %v714_v37 = vmul.f32 %v1696_v2, %v2002_v21  ;;  %v945_v9 = vadd.f32 %v913_v34, %v845_v59  ;;  %v715_v45 = vmul.f32 %v1697_v25, %v2002_v21  ;;  %v815_v17 = vmul.f32 %v1634_v38, %v2004_v22 }
  0x4a   : > { %v816_v19 = vmul.f32 %v1635_v42, %v2004_v22  ;;  %v946_v46 = vadd.f32 %v914_v40, %v846_v31  ;;  %v546_v24 = vadd.f32 %v514_v12, %v445_v35  ;;  %v547_v32 = vadd.f32 %v515_v5, %v446_v36 }
  0x4b   : > { %v915_v47 = vmul.f32 %v1666_v43, %v2017_v30  ;;  %v1045_v44 = vadd.f32 %v1013_v55, %v945_v9  ;;  %v916_v58 = vmul.f32 %v1667_v41, %v2017_v30  ;;  %v1015_v62 = vmul.f32 %v2009_v23, %v1698_v51 }
  0x4c   : > { %v247_v26 = vmul.f32 %v1632_v52, %v1989_v13  ;;  %v1046_v0 = vadd.f32 %v1014_v61, %v946_v46  ;;  %v646_v33 = vadd.f32 %v614_v7, %v546_v24  ;;  %v647_v1 = vadd.f32 %v615_v29, %v547_v32  ;;  %v1668_v61 = vld [vmem:[%s1987_s9 + $0xc1] sm:$0xff]  ;;  %v1669_v7 = vld [vmem:[%s1987_s9 + $0xc9] sm:$0xff] }
  0x4d   : > { %v248_v34 = vmul.f32 %v1633_v63, %v1989_v13  ;;  %v315_v3 = vmul.f32 %v1664_v27, %v1991_v14  ;;  %v316_v40 = vmul.f32 %v1665_v53, %v1991_v14  ;;  %v415_v48 = vmul.f32 %v1696_v2, %v1993_v15 }
  0x4e   : > { %v416_v55 = vmul.f32 %v1697_v25, %v1993_v15  ;;  %v1073_v49 = vpack.c.bf16 %v1046_v0, %v1045_v44  ;;  %v746_v50 = vadd.f32 %v714_v37, %v646_v33  ;;  %v747_v54 = vadd.f32 %v715_v45, %v647_v1  ;;  %v1637_v25 = vld [vmem:[%s1987_s9 + $0xc8] sm:$0xff] }
  0x4f   : > { %v1016_v52 = vmul.f32 %v2009_v23, %v1699_v39  ;;  %v347_v56 = vadd.f32 %v315_v3, %v247_v26  ;;  %v348_v57 = vadd.f32 %v316_v40, %v248_v34  ;;  %v516_v63 = vmul.f32 %v1634_v38, %v1995_v16  ;;  %v1700_v37 = vld [vmem:[%s1987_s9 + $0xc2] sm:$0xff]  ;;  %v1701_v1 = vld [vmem:[%s1987_s9 + $0xca] sm:$0xff] }
  0x50   : > { %v517_v60 = vmul.f32 %v1635_v42, %v1995_v16  ;;  %1769 = vmatprep.mubr.msk.bf16.mxu0 %vm1093_vm1, %v1073_v49  ;;  %v847_v27 = vadd.f32 %v815_v17, %v746_v50  ;;  %v848_v53 = vadd.f32 %v816_v19, %v747_v54  ;;  %v616_v2 = vmul.f32 %v1666_v43, %v2000_v20 }
  0x51   : > { %v617_v6 = vmul.f32 %v1667_v41, %v2000_v20  ;;  %v447_v8 = vadd.f32 %v415_v48, %v347_v56  ;;  %v448_v10 = vadd.f32 %v416_v55, %v348_v57  ;;  %v716_v11 = vmul.f32 %v1698_v51, %v2002_v21  ;;  %v2222_v55 = vld [vmem:[%s1987_s9 + $0xd8] sm:$0xff] }
  0x52   : > { %v717_v12 = vmul.f32 %v1699_v39, %v2002_v21  ;;  %v947_v4 = vadd.f32 %v915_v47, %v847_v27  ;;  %v948_v28 = vadd.f32 %v916_v58, %v848_v53  ;;  %v817_v5 = vmul.f32 %v1636_v18, %v2004_v22  ;;  %v1670_v53 = vld [vmem:[%s1987_s9 + $0xd9] sm:$0xff] }
  0x53   : > { %v818_v59 = vmul.f32 %v1637_v25, %v2004_v22  ;;  %v548_v29 = vadd.f32 %v516_v63, %v447_v8  ;;  %v549_v31 = vadd.f32 %v517_v60, %v448_v10  ;;  %v917_v35 = vmul.f32 %v1668_v61, %v2017_v30 }
  0x54   : > { %v918_v36 = vmul.f32 %v1669_v7, %v2017_v30  ;;  %v1047_v9 = vadd.f32 %v1015_v62, %v947_v4  ;;  %v1048_v45 = vadd.f32 %v1016_v52, %v948_v28  ;;  %v1017_v17 = vmul.f32 %v2009_v23, %v1700_v37  ;;  %v1639_v52 = vld [vmem:[%s1987_s9 + $0xe0] sm:$0xff] }
  0x55   : > { %v249_v19 = vmul.f32 %v1634_v38, %v1989_v13  ;;  %v648_v46 = vadd.f32 %v616_v2, %v548_v29  ;;  %v649_v24 = vadd.f32 %v617_v6, %v549_v31  ;;  %v250_v32 = vmul.f32 %v1635_v42, %v1989_v13  ;;  %v1671_v2 = vld [vmem:[%s1987_s9 + $0xe1] sm:$0xff] }
  0x56   : > { %v317_v47 = vmul.f32 %v1666_v43, %v1991_v14  ;;  %v1074_v44 = vpack.c.bf16 %v1048_v45, %v1047_v9  ;;  %v318_v58 = vmul.f32 %v1667_v41, %v1991_v14  ;;  %v417_v26 = vmul.f32 %v1698_v51, %v1993_v15  ;;  %v1702_v6 = vld [vmem:[%s1987_s9 + $0xda] sm:$0xff] }
  0x57   : > { %v418_v0 = vmul.f32 %v1699_v39, %v1993_v15  ;;  %v748_v62 = vadd.f32 %v716_v11, %v648_v46  ;;  %v749_v33 = vadd.f32 %v717_v12, %v649_v24  ;;  %v518_v38 = vmul.f32 %v1636_v18, %v1995_v16 }
  0x58   : > { %v349_v34 = vadd.f32 %v317_v47, %v249_v19  ;;  %1770 = vmatmul.mubr.msk.bf16.gmra.mrb[8].mxu0 %vm1093_vm1, %v1074_v44  ;;  %v1018_v42 = vmul.f32 %v2009_v23, %v1701_v1  ;;  %v350_v43 = vadd.f32 %v318_v58, %v250_v32  ;;  %v519_v3 = vmul.f32 %v1637_v25, %v1995_v16 }
  0x59   : > { %v618_v41 = vmul.f32 %v1668_v61, %v2000_v20  ;;  %v849_v51 = vadd.f32 %v817_v5, %v748_v62  ;;  %v850_v39 = vadd.f32 %v818_v59, %v749_v33  ;;  %v619_v48 = vmul.f32 %v1669_v7, %v2000_v20  ;;  %v1640_v62 = vld [vmem:[%s1987_s9 + $0xf0] sm:$0xff] }
  0x5a   : > { %v449_v40 = vadd.f32 %v417_v26, %v349_v34  ;;  %v450_v49 = vadd.f32 %v418_v0, %v350_v43  ;;  %v718_v50 = vmul.f32 %v1700_v37, %v2002_v21  ;;  %v719_v54 = vmul.f32 %v1701_v1, %v2002_v21 }
  0x5b   : > { %v819_v56 = vmul.f32 %v2222_v55, %v2004_v22  ;;  %v949_v57 = vadd.f32 %v917_v35, %v849_v51  ;;  %v950_v63 = vadd.f32 %v918_v36, %v850_v39  ;;  %v820_v27 = vmul.f32 %v1639_v52, %v2004_v22  ;;  %v1672_v39 = vld [vmem:[%s1987_s9 + $0xf1] sm:$0xff] }
  0x5c   : > { %v550_v60 = vadd.f32 %v518_v38, %v449_v40  ;;  %v551_v8 = vadd.f32 %v519_v3, %v450_v49  ;;  %v919_v10 = vmul.f32 %v1670_v53, %v2017_v30  ;;  %v920_v11 = vmul.f32 %v1671_v2, %v2017_v30  ;;  %v1641_v38 = vld [vmem:[%s1987_s9 + $0xf8] sm:$0xff] }
  0x5d   : > { %v1019_v12 = vmul.f32 %v2009_v23, %v1702_v6  ;;  %v1049_v4 = vadd.f32 %v1017_v17, %v949_v57  ;;  %v1050_v28 = vadd.f32 %v1018_v42, %v950_v63  ;;  %v251_v59 = vmul.f32 %v1636_v18, %v1989_v13  ;;  %v1703_v17 = vld [vmem:[%s1987_s9 + $0xe2] sm:$0xff]  ;;  %v1673_v40 = vld [vmem:[%s1987_s9 + $0xf9] sm:$0xff] }
  0x5e   : > { %v650_v5 = vadd.f32 %v618_v41, %v550_v60  ;;  %v651_v29 = vadd.f32 %v619_v48, %v551_v8  ;;  %v252_v31 = vmul.f32 %v1637_v25, %v1989_v13  ;;  %v319_v35 = vmul.f32 %v1668_v61, %v1991_v14  ;;  %v1704_v48 = vld [vmem:[%s1987_s9 + $0xf2] sm:$0xff] }
  0x5f   : > { %v320_v36 = vmul.f32 %v1669_v7, %v1991_v14  ;;  %v1075_v9 = vpack.c.bf16 %v1050_v28, %v1049_v4  ;;  %v419_v19 = vmul.f32 %v1700_v37, %v1993_v15  ;;  %v420_v46 = vmul.f32 %v1701_v1, %v1993_v15 }
  0x60   : > { %v750_v45 = vadd.f32 %v718_v50, %v650_v5  ;;  %v751_v24 = vadd.f32 %v719_v54, %v651_v29  ;;  %v351_v32 = vadd.f32 %v319_v35, %v251_v59  ;;  %v520_v18 = vmul.f32 %v2222_v55, %v1995_v16  ;;  %v1705_v29 = vld [vmem:[%s1987_s9 + $0xfa] sm:$0xff] }
  0x61   : > { %v352_v47 = vadd.f32 %v320_v36, %v252_v31  ;;  %1773 = vmatprep.mubr.msk.bf16.mxu0 %vm1093_vm1, %v1075_v9  ;;  %v1020_v61 = vmul.f32 %v2009_v23, %v1703_v17  ;;  %v521_v7 = vmul.f32 %v1639_v52, %v1995_v16  ;;  %v620_v37 = vmul.f32 %v1670_v53, %v2000_v20 }
  0x62   : > { %v851_v25 = vadd.f32 %v819_v56, %v750_v45  ;;  %v852_v44 = vadd.f32 %v820_v27, %v751_v24  ;;  %v451_v58 = vadd.f32 %v419_v19, %v351_v32  ;;  %v621_v0 = vmul.f32 %v1671_v2, %v2000_v20  ;;  %v1642_v24 = vld [vmem:[%s1987_s9 + $0x108] sm:$0xff] }
  0x63   : > { %v452_v26 = vadd.f32 %v420_v46, %v352_v47  ;;  %v720_v1 = vmul.f32 %v1702_v6, %v2002_v21  ;;  %v721_v34 = vmul.f32 %v1703_v17, %v2002_v21  ;;  %v821_v42 = vmul.f32 %v1640_v62, %v2004_v22 }
  0x64   : > { %v951_v33 = vadd.f32 %v919_v10, %v851_v25  ;;  %v952_v43 = vadd.f32 %v920_v11, %v852_v44  ;;  %v552_v3 = vadd.f32 %v520_v18, %v451_v58  ;;  %v822_v51 = vmul.f32 %v1641_v38, %v2004_v22  ;;  %v1643_v18 = vld [vmem:[%s1987_s9 + $0x110] sm:$0xff] }
  0x65   : > { %v553_v41 = vadd.f32 %v521_v7, %v452_v26  ;;  %v921_v50 = vmul.f32 %v1672_v39, %v2017_v30  ;;  %v922_v54 = vmul.f32 %v1673_v40, %v2017_v30  ;;  %v1021_v56 = vmul.f32 %v2009_v23, %v1704_v48  ;;  %v1675_v58 = vld [vmem:[%s1987_s9 + $0x111] sm:$0xff] }
  0x66   : > { %v1051_v49 = vadd.f32 %v1019_v12, %v951_v33  ;;  %v1052_v57 = vadd.f32 %v1020_v61, %v952_v43  ;;  %v652_v63 = vadd.f32 %v620_v37, %v552_v3  ;;  %v253_v27 = vmul.f32 %v2222_v55, %v1989_v13  ;;  %v1674_v61 = vld [vmem:[%s1987_s9 + $0x109] sm:$0xff] }
  0x67   : > { %v653_v60 = vadd.f32 %v621_v0, %v553_v41  ;;  %v254_v8 = vmul.f32 %v1639_v52, %v1989_v13  ;;  %v321_v10 = vmul.f32 %v1670_v53, %v1991_v14  ;;  %v322_v11 = vmul.f32 %v1671_v2, %v1991_v14  ;;  %v1706_v0 = vld [vmem:[%s1987_s9 + $0x10a] sm:$0xff] }
  0x68   : > { %v421_v12 = vmul.f32 %v1702_v6, %v1993_v15  ;;  %v1076_v4 = vpack.c.bf16 %v1052_v57, %v1051_v49  ;;  %v752_v28 = vadd.f32 %v720_v1, %v652_v63  ;;  %v422_v59 = vmul.f32 %v1703_v17, %v1993_v15 }
  0x69   : > { %v753_v5 = vadd.f32 %v721_v34, %v653_v60  ;;  %v353_v31 = vadd.f32 %v321_v10, %v253_v27  ;;  %v354_v35 = vadd.f32 %v322_v11, %v254_v8  ;;  %v522_v55 = vmul.f32 %v1640_v62, %v1995_v16 }
  0x6a   : > { %v523_v52 = vmul.f32 %v1641_v38, %v1995_v16  ;;  %1774 = vmatmul.mubr.msk.bf16.gmra.mrb[12].mxu0 %vm1093_vm1, %v1076_v4  ;;  %v853_v53 = vadd.f32 %v821_v42, %v752_v28  ;;  %v1022_v6 = vmul.f32 %v2009_v23, %v1705_v29  ;;  %v622_v36 = vmul.f32 %v1672_v39, %v2000_v20 }
  0x6b   : > { %v854_v2 = vadd.f32 %v822_v51, %v753_v5  ;;  %v453_v9 = vadd.f32 %v421_v12, %v353_v31  ;;  %v454_v45 = vadd.f32 %v422_v59, %v354_v35  ;;  %v623_v19 = vmul.f32 %v1673_v40, %v2000_v20  ;;  %v1645_v31 = vld [vmem:[%s1987_s9 + $0x128] sm:$0xff] }
  0x6c   : > { %v722_v46 = vmul.f32 %v1704_v48, %v2002_v21  ;;  %v953_v17 = vadd.f32 %v921_v50, %v853_v53  ;;  %v723_v47 = vmul.f32 %v1705_v29, %v2002_v21  ;;  %v823_v25 = vmul.f32 %v1642_v24, %v2004_v22  ;;  %v1707_v50 = vld [vmem:[%s1987_s9 + $0x112] sm:$0xff] }
  0x6d   : > { %v954_v32 = vadd.f32 %v922_v54, %v854_v2  ;;  %v554_v7 = vadd.f32 %v522_v55, %v453_v9  ;;  %v555_v37 = vadd.f32 %v523_v52, %v454_v45  ;;  %v824_v44 = vmul.f32 %v1643_v18, %v2004_v22  ;;  %v1676_v2 = vld [vmem:[%s1987_s9 + $0x121] sm:$0xff] }
  0x6e   : > { %v923_v26 = vmul.f32 %v1674_v61, %v2017_v30  ;;  %v1053_v33 = vadd.f32 %v1021_v56, %v953_v17  ;;  %v924_v34 = vmul.f32 %v1675_v58, %v2017_v30  ;;  %v1023_v42 = vmul.f32 %v2009_v23, %v1706_v0 }
  0x6f   : > { %v1054_v1 = vadd.f32 %v1022_v6, %v954_v32  ;;  %v654_v43 = vadd.f32 %v622_v36, %v554_v7  ;;  %v655_v3 = vadd.f32 %v623_v19, %v555_v37  ;;  %v255_v41 = vmul.f32 %v1640_v62, %v1989_v13  ;;  %v1677_v6 = vld [vmem:[%s1987_s9 + $0x129] sm:$0xff] }
  0x70   : > { %v256_v51 = vmul.f32 %v1641_v38, %v1989_v13  ;;  %v323_v54 = vmul.f32 %v1672_v39, %v1991_v14  ;;  %v324_v57 = vmul.f32 %v1673_v40, %v1991_v14  ;;  %v423_v63 = vmul.f32 %v1704_v48, %v1993_v15 }
  0x71   : > { %v1077_v49 = vpack.c.bf16 %v1054_v1, %v1053_v33  ;;  %v754_v56 = vadd.f32 %v722_v46, %v654_v43  ;;  %v755_v60 = vadd.f32 %v723_v47, %v655_v3  ;;  %v1024_v27 = vmul.f32 %v2009_v23, %v1707_v50  ;;  %v1708_v46 = vld [vmem:[%s1987_s9 + $0x122] sm:$0xff] }
  0x72   : > { %v424_v8 = vmul.f32 %v1705_v29, %v1993_v15  ;;  %v355_v62 = vadd.f32 %v323_v54, %v255_v41  ;;  %v356_v38 = vadd.f32 %v324_v57, %v256_v51  ;;  %v524_v10 = vmul.f32 %v1642_v24, %v1995_v16  ;;  %v1644_v29 = vld [vmem:[%s1987_s9 + $0x120] sm:$0xff]  ;;  %v1709_v41 = vld [vmem:[%s1987_s9 + $0x12a] sm:$0xff] }
  0x73   : > { %1777 = vmatprep.mubr.msk.bf16.mxu1 %vm1093_vm1, %v1077_v49  ;;  %v525_v39 = vmul.f32 %v1643_v18, %v1995_v16  ;;  %v855_v40 = vadd.f32 %v823_v25, %v754_v56  ;;  %v856_v48 = vadd.f32 %v824_v44, %v755_v60  ;;  %v624_v11 = vmul.f32 %v1674_v61, %v2000_v20 }
  0x74   : > { %v625_v12 = vmul.f32 %v1675_v58, %v2000_v20  ;;  %v455_v4 = vadd.f32 %v423_v63, %v355_v62  ;;  %v456_v28 = vadd.f32 %v424_v8, %v356_v38  ;;  %v724_v5 = vmul.f32 %v1706_v0, %v2002_v21  ;;  %v1646_v63 = vld [vmem:[%s1987_s9 + $0x138] sm:$0xff]  ;;  %v1647_v8 = vld [vmem:[%s1987_s9 + $0x140] sm:$0xff] }
  0x75   : > { %v725_v59 = vmul.f32 %v1707_v50, %v2002_v21  ;;  %v955_v35 = vadd.f32 %v923_v26, %v855_v40  ;;  %v956_v55 = vadd.f32 %v924_v34, %v856_v48  ;;  %v825_v52 = vmul.f32 %v1644_v29, %v2004_v22  ;;  %v1678_v48 = vld [vmem:[%s1987_s9 + $0x139] sm:$0xff] }
  0x76   : > { %v826_v53 = vmul.f32 %v1645_v31, %v2004_v22  ;;  %v556_v36 = vadd.f32 %v524_v10, %v455_v4  ;;  %v557_v9 = vadd.f32 %v525_v39, %v456_v28  ;;  %v925_v45 = vmul.f32 %v1676_v2, %v2017_v30 }
  0x77   : > { %v926_v19 = vmul.f32 %v1677_v6, %v2017_v30  ;;  %v1055_v17 = vadd.f32 %v1023_v42, %v955_v35  ;;  %v1056_v32 = vadd.f32 %v1024_v27, %v956_v55  ;;  %v1025_v47 = vmul.f32 %v2009_v23, %v1708_v46 }
  0x78   : > { %v257_v25 = vmul.f32 %v1642_v24, %v1989_v13  ;;  %v656_v7 = vadd.f32 %v624_v11, %v556_v36  ;;  %v657_v37 = vadd.f32 %v625_v12, %v557_v9  ;;  %v258_v44 = vmul.f32 %v1643_v18, %v1989_v13  ;;  %v1679_v11 = vld [vmem:[%s1987_s9 + $0x141] sm:$0xff] }
  0x79   : > { %v325_v26 = vmul.f32 %v1674_v61, %v1991_v14  ;;  %v1078_v33 = vpack.c.bf16 %v1056_v32, %v1055_v17  ;;  %v326_v1 = vmul.f32 %v1675_v58, %v1991_v14  ;;  %v425_v34 = vmul.f32 %v1706_v0, %v1993_v15  ;;  %v1710_v12 = vld [vmem:[%s1987_s9 + $0x13a] sm:$0xff] }
  0x7a   : > { %v426_v43 = vmul.f32 %v1707_v50, %v1993_v15  ;;  %v756_v42 = vadd.f32 %v724_v5, %v656_v7  ;;  %v757_v3 = vadd.f32 %v725_v59, %v657_v37  ;;  %v526_v24 = vmul.f32 %v1644_v29, %v1995_v16 }
  0x7b   : > { %v357_v51 = vadd.f32 %v325_v26, %v257_v25  ;;  %1778 = vmatmul.mubr.msk.bf16.vlgmr.msra.gmra.mrb[0].mxu1 %vm1093_vm1, %v1078_v33  ;;  %v1026_v18 = vmul.f32 %v2009_v23, %v1709_v41  ;;  %v358_v61 = vadd.f32 %v326_v1, %v258_v44  ;;  %v527_v49 = vmul.f32 %v1645_v31, %v1995_v16 }
  0x7c   : > { %v626_v58 = vmul.f32 %v1676_v2, %v2000_v20  ;;  %v857_v0 = vadd.f32 %v825_v52, %v756_v42  ;;  %v858_v50 = vadd.f32 %v826_v53, %v757_v3  ;;  %v627_v57 = vmul.f32 %v1677_v6, %v2000_v20 }
  0x7d   : > { %v457_v54 = vadd.f32 %v425_v34, %v357_v51  ;;  %v458_v56 = vadd.f32 %v426_v43, %v358_v61  ;;  %v726_v60 = vmul.f32 %v1708_v46, %v2002_v21  ;;  %v727_v27 = vmul.f32 %v1709_v41, %v2002_v21  ;;  %v1648_v51 = vld [vmem:[%s1987_s9 + $0x150] sm:$0xff] }
  0x7e   : > { %v827_v62 = vmul.f32 %v1646_v63, %v2004_v22  ;;  %v957_v38 = vadd.f32 %v925_v45, %v857_v0  ;;  %v958_v10 = vadd.f32 %v926_v19, %v858_v50  ;;  %v828_v40 = vmul.f32 %v1647_v8, %v2004_v22  ;;  %v1680_v0 = vld [vmem:[%s1987_s9 + $0x151] sm:$0xff]  ;;  %v1681_v50 = vld [vmem:[%s1987_s9 + $0x159] sm:$0xff] }
  0x7f   : > { %v558_v39 = vadd.f32 %v526_v24, %v457_v54  ;;  %v559_v4 = vadd.f32 %v527_v49, %v458_v56  ;;  %v927_v28 = vmul.f32 %v1678_v48, %v2017_v30  ;;  %v928_v5 = vmul.f32 %v1679_v11, %v2017_v30  ;;  %v1649_v49 = vld [vmem:[%s1987_s9 + $0x158] sm:$0xff] }
  0x80   : > { %v1027_v59 = vmul.f32 %v2009_v23, %v1710_v12  ;;  %v1057_v35 = vadd.f32 %v1025_v47, %v957_v38  ;;  %v1058_v55 = vadd.f32 %v1026_v18, %v958_v10  ;;  %v259_v53 = vmul.f32 %v1644_v29, %v1989_v13  ;;  %v1711_v23 = vld [vmem:[%s1987_s9 + $0x142] sm:$0xff] }
  0x81   : > { %v658_v52 = vadd.f32 %v626_v58, %v558_v39  ;;  %v659_v36 = vadd.f32 %v627_v57, %v559_v4  ;;  %v260_v9 = vmul.f32 %v1645_v31, %v1989_v13  ;;  %v327_v45 = vmul.f32 %v1676_v2, %v1991_v14  ;;  %v2350_v2 = vld [vmem:[%s2698_s1 + $0x8] ss:$0 sm:$0xff] }
  0x82   : > { %v328_v19 = vmul.f32 %v1677_v6, %v1991_v14  ;;  %v1079_v17 = vpack.c.bf16 %v1058_v55, %v1057_v35  ;;  %v427_v25 = vmul.f32 %v1708_v46, %v1993_v15  ;;  %v428_v7 = vmul.f32 %v1709_v41, %v1993_v15 }
  0x83   : > { %v758_v32 = vadd.f32 %v726_v60, %v658_v52  ;;  %v759_v37 = vadd.f32 %v727_v27, %v659_v36  ;;  %v359_v47 = vadd.f32 %v327_v45, %v259_v53  ;;  %v528_v29 = vmul.f32 %v1646_v63, %v1995_v16  ;;  %v1712_v52 = vld [vmem:[%s1987_s9 + $0x152] sm:$0xff]  ;;  %v1713_v53 = vld [vmem:[%s1987_s9 + $0x15a] sm:$0xff] }
  0x84   : > { %v360_v44 = vadd.f32 %v328_v19, %v260_v9  ;;  %1781 = vmatprep.mubr.msk.bf16.mxu1 %vm1093_vm1, %v1079_v17  ;;  %v1028_v6 = vmul.f32 %v2350_v2, %v1711_v23  ;;  %v529_v46 = vmul.f32 %v1647_v8, %v1995_v16  ;;  %v628_v26 = vmul.f32 %v1678_v48, %v2000_v20 }
  0x85   : > { %v859_v31 = vadd.f32 %v827_v62, %v758_v32  ;;  %v860_v33 = vadd.f32 %v828_v40, %v759_v37  ;;  %v459_v1 = vadd.f32 %v427_v25, %v359_v47  ;;  %v629_v43 = vmul.f32 %v1679_v11, %v2000_v20 }
  0x86   : > { %v460_v34 = vadd.f32 %v428_v7, %v360_v44  ;;  %v728_v3 = vmul.f32 %v1710_v12, %v2002_v21  ;;  %v729_v41 = vmul.f32 %v1711_v23, %v2002_v21  ;;  %v829_v58 = vmul.f32 %v1648_v51, %v2004_v22  ;;  %v1650_v44 = vld [vmem:[%s1987_s9 + $0x168] sm:$0xff] }
  0x87   : > { %v959_v42 = vadd.f32 %v927_v28, %v859_v31  ;;  %v960_v24 = vadd.f32 %v928_v5, %v860_v33  ;;  %v560_v18 = vadd.f32 %v528_v29, %v459_v1  ;;  %v830_v57 = vmul.f32 %v1649_v49, %v2004_v22  ;;  %v1651_v29 = vld [vmem:[%s1987_s9 + $0x170] sm:$0xff] }
  0x88   : > { %v561_v61 = vadd.f32 %v529_v46, %v460_v34  ;;  %v929_v56 = vmul.f32 %v1680_v0, %v2017_v30  ;;  %v930_v60 = vmul.f32 %v1681_v50, %v2017_v30  ;;  %v261_v10 = vmul.f32 %v1646_v63, %v1989_v13  ;;  %v1682_v33 = vld [vmem:[%s1987_s9 + $0x169] sm:$0xff]  ;;  %v1683_v1 = vld [vmem:[%s1987_s9 + $0x171] sm:$0xff] }
  0x89   : > { %v1059_v54 = vadd.f32 %v1027_v59, %v959_v42  ;;  %v1060_v27 = vadd.f32 %v1028_v6, %v960_v24  ;;  %v660_v62 = vadd.f32 %v628_v26, %v560_v18  ;;  %v262_v39 = vmul.f32 %v1647_v8, %v1989_v13 }
  0x8a   : > { %v661_v38 = vadd.f32 %v629_v43, %v561_v61  ;;  %v329_v40 = vmul.f32 %v1678_v48, %v1991_v14  ;;  %v330_v4 = vmul.f32 %v1679_v11, %v1991_v14  ;;  %v429_v28 = vmul.f32 %v1710_v12, %v1993_v15 }
  0x8b   : > { %v1080_v5 = vpack.c.bf16 %v1060_v27, %v1059_v54  ;;  %v760_v59 = vadd.f32 %v728_v3, %v660_v62  ;;  %v430_v55 = vmul.f32 %v1711_v23, %v1993_v15  ;;  %v530_v63 = vmul.f32 %v1648_v51, %v1995_v16  ;;  %v1714_v54 = vld [vmem:[%s1987_s9 + $0x16a] sm:$0xff] }
  0x8c   : > { %v761_v35 = vadd.f32 %v729_v41, %v661_v38  ;;  %v361_v36 = vadd.f32 %v329_v40, %v261_v10  ;;  %v362_v9 = vadd.f32 %v330_v4, %v262_v39  ;;  %v531_v8 = vmul.f32 %v1649_v49, %v1995_v16 }
  0x8d   : > { %1782 = vmatmul.mubr.msk.bf16.gmra.mrb[4].mxu1 %vm1093_vm1, %v1080_v5  ;;  %v861_v48 = vadd.f32 %v829_v58, %v760_v59  ;;  %v1029_v12 = vmul.f32 %v2350_v2, %v1712_v52  ;;  %v1030_v45 = vmul.f32 %v2350_v2, %v1713_v53  ;;  %v630_v32 = vmul.f32 %v1680_v0, %v2000_v20 }
  0x8e   : > { %v862_v11 = vadd.f32 %v830_v57, %v761_v35  ;;  %v461_v19 = vadd.f32 %v429_v28, %v361_v36  ;;  %v462_v17 = vadd.f32 %v430_v55, %v362_v9  ;;  %v631_v25 = vmul.f32 %v1681_v50, %v2000_v20 }
  0x8f   : > { %v961_v7 = vadd.f32 %v929_v56, %v861_v48  ;;  %v730_v23 = vmul.f32 %v1712_v52, %v2002_v21  ;;  %v731_v47 = vmul.f32 %v1713_v53, %v2002_v21  ;;  %v831_v46 = vmul.f32 %v1650_v44, %v2004_v22 }
  0x90   : > { %v962_v37 = vadd.f32 %v930_v60, %v862_v11  ;;  %v562_v31 = vadd.f32 %v530_v63, %v461_v19  ;;  %v563_v6 = vadd.f32 %v531_v8, %v462_v17  ;;  %v832_v26 = vmul.f32 %v1651_v29, %v2004_v22  ;;  %v1653_v8 = vld [vmem:[%s1987_s9 + $0x188] sm:$0xff] }
  0x91   : > { %v1061_v34 = vadd.f32 %v1029_v12, %v961_v7  ;;  %v931_v42 = vmul.f32 %v1682_v33, %v2017_v30  ;;  %v932_v3 = vmul.f32 %v1683_v1, %v2017_v30  ;;  %v263_v18 = vmul.f32 %v1648_v51, %v1989_v13  ;;  %v1715_v51 = vld [vmem:[%s1987_s9 + $0x172] sm:$0xff]  ;;  %v1684_v11 = vld [vmem:[%s1987_s9 + $0x181] sm:$0xff]  ;;  %v1685_v17 = vld [vmem:[%s1987_s9 + $0x189] sm:$0xff] }
  0x92   : > { %v1062_v43 = vadd.f32 %v1030_v45, %v962_v37  ;;  %v662_v41 = vadd.f32 %v630_v32, %v562_v31  ;;  %v663_v24 = vadd.f32 %v631_v25, %v563_v6  ;;  %v264_v61 = vmul.f32 %v1649_v49, %v1989_v13 }
  0x93   : > { %v331_v57 = vmul.f32 %v1680_v0, %v1991_v14  ;;  %v332_v56 = vmul.f32 %v1681_v50, %v1991_v14  ;;  %v431_v60 = vmul.f32 %v1712_v52, %v1993_v15  ;;  %v1031_v38 = vmul.f32 %v2350_v2, %v1714_v54 }
  0x94   : > { %v1081_v58 = vpack.c.bf16 %v1062_v43, %v1061_v34  ;;  %v762_v27 = vadd.f32 %v730_v23, %v662_v41  ;;  %v763_v62 = vadd.f32 %v731_v47, %v663_v24  ;;  %v432_v10 = vmul.f32 %v1713_v53, %v1993_v15  ;;  %v1652_v53 = vld [vmem:[%s1987_s9 + $0x180] sm:$0xff] }
  0x95   : > { %v363_v39 = vadd.f32 %v331_v57, %v263_v18  ;;  %v364_v49 = vadd.f32 %v332_v56, %v264_v61  ;;  %v532_v40 = vmul.f32 %v1650_v44, %v1995_v16  ;;  %v533_v0 = vmul.f32 %v1651_v29, %v1995_v16  ;;  %v1716_v24 = vld [vmem:[%s1987_s9 + $0x182] sm:$0xff]  ;;  %v1717_v18 = vld [vmem:[%s1987_s9 + $0x18a] sm:$0xff] }
  0x96   : > { %1785 = vmatprep.mubr.msk.bf16.mxu1 %vm1093_vm1, %v1081_v58  ;;  %v863_v50 = vadd.f32 %v831_v46, %v762_v27  ;;  %v864_v4 = vadd.f32 %v832_v26, %v763_v62  ;;  %v1032_v28 = vmul.f32 %v2350_v2, %v1715_v51  ;;  %v632_v5 = vmul.f32 %v1682_v33, %v2000_v20 }
  0x97   : > { %v463_v59 = vadd.f32 %v431_v60, %v363_v39  ;;  %v464_v35 = vadd.f32 %v432_v10, %v364_v49  ;;  %v633_v55 = vmul.f32 %v1683_v1, %v2000_v20  ;;  %v732_v52 = vmul.f32 %v1714_v54, %v2002_v21  ;;  %v1654_v60 = vld [vmem:[%s1987_s9 + $0x198] sm:$0xff] }
  0x98   : > { %v963_v36 = vadd.f32 %v931_v42, %v863_v50  ;;  %v964_v9 = vadd.f32 %v932_v3, %v864_v4  ;;  %v733_v63 = vmul.f32 %v1715_v51, %v2002_v21  ;;  %v833_v48 = vmul.f32 %v1652_v53, %v2004_v22  ;;  %v1686_v49 = vld [vmem:[%s1987_s9 + $0x199] sm:$0xff] }
  0x99   : > { %v564_v12 = vadd.f32 %v532_v40, %v463_v59  ;;  %v565_v45 = vadd.f32 %v533_v0, %v464_v35  ;;  %v834_v19 = vmul.f32 %v1653_v8, %v2004_v22  ;;  %v933_v32 = vmul.f32 %v1684_v11, %v2017_v30  ;;  %v1718_v59 = vld [vmem:[%s1987_s9 + $0x19a] sm:$0xff] }
  0x9a   : > { %v1063_v25 = vadd.f32 %v1031_v38, %v963_v36  ;;  %v1064_v7 = vadd.f32 %v1032_v28, %v964_v9  ;;  %v934_v37 = vmul.f32 %v1685_v17, %v2017_v30  ;;  %v265_v23 = vmul.f32 %v1650_v44, %v1989_v13  ;;  %v1687_v28 = vld [vmem:[%s1987_s9 + $0x1a1] sm:$0xff] }
  0x9b   : > { %v664_v47 = vadd.f32 %v632_v5, %v564_v12  ;;  %v665_v31 = vadd.f32 %v633_v55, %v565_v45  ;;  %v266_v6 = vmul.f32 %v1651_v29, %v1989_v13  ;;  %v333_v46 = vmul.f32 %v1682_v33, %v1991_v14 }
  0x9c   : > { %v1082_v26 = vpack.c.bf16 %v1064_v7, %v1063_v25  ;;  %v334_v34 = vmul.f32 %v1683_v1, %v1991_v14  ;;  %v433_v43 = vmul.f32 %v1714_v54, %v1993_v15  ;;  %v434_v42 = vmul.f32 %v1715_v51, %v1993_v15  ;;  %v1655_v51 = vld [vmem:[%s1987_s9 + $0x1a0] sm:$0xff] }
  0x9d   : > { %v764_v3 = vadd.f32 %v732_v52, %v664_v47  ;;  %v765_v41 = vadd.f32 %v733_v63, %v665_v31  ;;  %v365_v61 = vadd.f32 %v333_v46, %v265_v23  ;;  %v534_v44 = vmul.f32 %v1652_v53, %v1995_v16  ;;  %v1719_v53 = vld [vmem:[%s1987_s9 + $0x1a2] sm:$0xff]  ;;  %s1842_s9 = sshll.u32 %s1902_s19, 4  ;;  %s1843_s9 = int_to_ptr.vmem [resolvable:$false] %s1842_s9 }
  0x9e   : > { %1786 = vmatmul.mubr.msk.bf16.gmra.mrb[8].mxu1 %vm1093_vm1, %v1082_v26  ;;  %v1033_v13 = vmul.f32 %v2350_v2, %v1716_v24  ;;  %v1034_v29 = vmul.f32 %v2350_v2, %v1717_v18  ;;  %v366_v14 = vadd.f32 %v334_v34, %v266_v6  ;;  %v535_v33 = vmul.f32 %v1653_v8, %v1995_v16  ;;  %s1844_s10 = scalar_lea.vmem %s1843_s9, 64  ;;  %p1845_p0 = scmp.lt.s32.totalorder %s2656_s29, %s1843_s9 }
  0x9f   : > { %v865_v15 = vadd.f32 %v833_v48, %v764_v3  ;;  %v866_v1 = vadd.f32 %v834_v19, %v765_v41  ;;  %v465_v58 = vadd.f32 %v433_v43, %v365_v61  ;;  %v634_v54 = vmul.f32 %v1684_v11, %v2000_v20  ;;  %p1846_p1 = scmp.lt.s32.totalorder %s1844_s10, %s1838_s8 }
  0xa0   : > { %v466_v57 = vadd.f32 %v434_v42, %v366_v14  ;;  %v635_v56 = vmul.f32 %v1685_v17, %v2000_v20  ;;  %v734_v10 = vmul.f32 %v1716_v24, %v2002_v21  ;;  %v735_v16 = vmul.f32 %v1717_v18, %v2002_v21 }
  0xa1   : > { %v965_v27 = vadd.f32 %v933_v32, %v865_v15  ;;  %v966_v62 = vadd.f32 %v934_v37, %v866_v1  ;;  %v566_v38 = vadd.f32 %v534_v44, %v465_v58  ;;  %v835_v4 = vmul.f32 %v1654_v60, %v2004_v22  ;;  %p1847_p2 = por %p1846_p1, %p1845_p0 }
  0xa2   : > { %v567_v39 = vadd.f32 %v535_v33, %v466_v57  ;;  %v836_v5 = vmul.f32 %v1655_v51, %v2004_v22  ;;  %v935_v52 = vmul.f32 %v1686_v49, %v2017_v30  ;;  %v936_v9 = vmul.f32 %v1687_v28, %v2017_v30  ;;  %v2450_v30 = vld [vmem:[%s2700_s3] ss:$0 sm:$0xff] }
  0xa3   : > { %v1065_v40 = vadd.f32 %v1033_v13, %v965_v27  ;;  %v1066_v0 = vadd.f32 %v1034_v29, %v966_v62  ;;  %v666_v50 = vadd.f32 %v634_v54, %v566_v38  ;;  %v1035_v63 = vmul.f32 %v2350_v2, %v1718_v59  ;;  %p1848_p3 = pnand %p1847_p2, %p1841_p13 }
  0xa4   : > { %v667_v20 = vadd.f32 %v635_v56, %v567_v39  ;;  %v1036_v48 = vmul.f32 %v2350_v2, %v1719_v53 }
  0xa5   : > { %v1083_v35 = vpack.c.bf16 %v1066_v0, %v1065_v40  ;;  %v766_v55 = vadd.f32 %v734_v10, %v666_v50 }
  0xa6   : > { %v767_v36 = vadd.f32 %v735_v16, %v667_v20 }
  0xa7   : > { %1789 = vmatprep.mubr.msk.bf16.mxu1 %vm1093_vm1, %v1083_v35  ;;  %v867_v21 = vadd.f32 %v835_v4, %v766_v55 }
  0xa8   : > { %v868_v8 = vadd.f32 %v836_v5, %v767_v36 }
  0xa9   : > { %v967_v11 = vadd.f32 %v935_v52, %v867_v21 }
  0xaa   : > { %v968_v12 = vadd.f32 %v936_v9, %v868_v8 }
  0xab   : > { %v1067_v22 = vadd.f32 %v1035_v63, %v967_v11 }
  0xac   : > { %v1068_v45 = vadd.f32 %v1036_v48, %v968_v12 }
  0xae   : > { %v1084_v19 = vpack.c.bf16 %v1068_v45, %v1067_v22 }
  0xb0   : > { %1790 = vmatmul.mubr.msk.bf16.gmra.mrb[12].mxu1 %vm1093_vm1, %v1084_v19 }
 0x108   : > { %v1763_v17 = vpop.f32.mrb[0].mxu0 }
 0x109   : > { %v1180_v32 = vpop.f32.mrb[1].mxu0  ;;  %v2461_v47 = vadd.f32 %v1763_v17, %v2450_v30 }
 0x10a   : > { %v1764_v25 = vpop.f32.mrb[2].mxu0  ;;  %v2456_v2 = vadd.f32 %v2450_v30, %v1180_v32 }
 0x10b   : > { %v1183_v7 = vpop.f32.mrb[3].mxu0  ;;  %v2465_v43 = vadd.f32 %v1764_v25, %v2450_v30 }
 0x10c   : > { %v2453_v37 = vadd.f32 %v2450_v30, %v1183_v7 }
 0x10e   : > { %v1307_v23 = vadd.f32 %v2453_v37, %v2456_v2 }
 0x110   : > { %v1308_v46 = vadd.f32 %v1307_v23, %v2461_v47 }
 0x112   : > { %v1309_v3 = vadd.f32 %v1308_v46, %v2465_v43 }
 0x11b   : > { %v1767_v31 = vpop.f32.mrb[4].mxu0 }
 0x11c   : > { %v1196_v6 = vpop.f32.mrb[5].mxu0  ;;  %v2477_v61 = vadd.f32 %v1767_v31, %v2450_v30 }
 0x11d   : > { %v1768_v26 = vpop.f32.mrb[6].mxu0  ;;  %v2468_v42 = vadd.f32 %v2450_v30, %v1196_v6 }
 0x11e   : > { %v1199_v34 = vpop.f32.mrb[7].mxu0  ;;  %v2481_v33 = vadd.f32 %v1768_v26, %v2450_v30 }
 0x11f   : > { %v1310_v41 = vadd.f32 %v1309_v3, %v2468_v42  ;;  %v2473_v24 = vadd.f32 %v2450_v30, %v1199_v34 }
 0x121   : > { %v1311_v18 = vadd.f32 %v1310_v41, %v2473_v24 }
 0x123   : > { %v1312_v13 = vadd.f32 %v1311_v18, %v2477_v61 }
 0x125   : > { %v1313_v58 = vadd.f32 %v1312_v13, %v2481_v33 }
 0x12b   : > { %v1771_v44 = vpop.f32.mrb[8].mxu0 }
 0x12c   : > { %v1212_v29 = vpop.f32.mrb[9].mxu0  ;;  %v2493_v60 = vadd.f32 %v1771_v44, %v2450_v30 }
 0x12d   : > { %v1772_v14 = vpop.f32.mrb[10].mxu0  ;;  %v2484_v1 = vadd.f32 %v2450_v30, %v1212_v29 }
 0x12e   : > { %v1215_v15 = vpop.f32.mrb[11].mxu0  ;;  %v2497_v38 = vadd.f32 %v1772_v14, %v2450_v30 }
 0x12f   : > { %v1314_v54 = vadd.f32 %v1313_v58, %v2484_v1  ;;  %v2489_v57 = vadd.f32 %v2450_v30, %v1215_v15 }
 0x131   : > { %v1315_v56 = vadd.f32 %v1314_v54, %v2489_v57 }
 0x133   : > { %v1316_v27 = vadd.f32 %v1315_v56, %v2493_v60 }
 0x135   : > { %v1317_v16 = vadd.f32 %v1316_v27, %v2497_v38 }
 0x13d   : > { %v1775_v62 = vpop.f32.mrb[12].mxu0 }
 0x13e   : > { %v1228_v10 = vpop.f32.mrb[13].mxu0  ;;  %v2509_v4 = vadd.f32 %v1775_v62, %v2450_v30 }
 0x13f   : > { %v1776_v51 = vpop.f32.mrb[14].mxu0  ;;  %v2500_v39 = vadd.f32 %v2450_v30, %v1228_v10 }
 0x140   : > { %v1231_v49 = vpop.f32.mrb[15].mxu0  ;;  %v2513_v20 = vadd.f32 %v1776_v51, %v2450_v30 }
 0x141   : > { %v1318_v40 = vadd.f32 %v1317_v16, %v2500_v39  ;;  %v2505_v0 = vadd.f32 %v2450_v30, %v1231_v49 }
 0x143   : > { %v1319_v50 = vadd.f32 %v1318_v40, %v2505_v0 }
 0x145   : > { %v1320_v28 = vadd.f32 %v1319_v50, %v2509_v4 }
 0x147   : > { %v1321_v55 = vadd.f32 %v1320_v28, %v2513_v20 }
 0x14e   : > { %v1779_v5 = vpop.f32.mrb[0].mxu1 }
 0x14f   : > { %v1244_v59 = vpop.f32.mrb[1].mxu1  ;;  %v2525_v63 = vadd.f32 %v1779_v5, %v2450_v30 }
 0x150   : > { %v2516_v35 = vadd.f32 %v2450_v30, %v1244_v59  ;;  %v1780_v52 = vpop.f32.mrb[2].mxu1 }
 0x151   : > { %v1247_v53 = vpop.f32.mrb[3].mxu1  ;;  %v2529_v48 = vadd.f32 %v1780_v52, %v2450_v30 }
 0x152   : > { %v1322_v36 = vadd.f32 %v1321_v55, %v2516_v35  ;;  %v2521_v9 = vadd.f32 %v2450_v30, %v1247_v53 }
 0x154   : > { %v1323_v21 = vadd.f32 %v1322_v36, %v2521_v9 }
 0x156   : > { %v1324_v8 = vadd.f32 %v1323_v21, %v2525_v63 }
 0x158   : > { %v1325_v12 = vadd.f32 %v1324_v8, %v2529_v48 }
 0x160   : > { %v1783_v11 = vpop.f32.mrb[4].mxu1 }
 0x161   : > { %v1260_v22 = vpop.f32.mrb[5].mxu1  ;;  %v2540_v7 = vadd.f32 %v1783_v11, %v2450_v30 }
 0x162   : > { %v2533_v45 = vadd.f32 %v2450_v30, %v1260_v22  ;;  %v1784_v19 = vpop.f32.mrb[6].mxu1 }
 0x163   : > { %v1263_v17 = vpop.f32.mrb[7].mxu1  ;;  %v2544_v31 = vadd.f32 %v1784_v19, %v2450_v30 }
 0x164   : > { %v1326_v32 = vadd.f32 %v1325_v12, %v2533_v45  ;;  %v2537_v25 = vadd.f32 %v2450_v30, %v1263_v17 }
 0x166   : > { %v1327_v23 = vadd.f32 %v1326_v32, %v2537_v25 }
 0x168   : > { %v1328_v6 = vadd.f32 %v1327_v23, %v2540_v7 }
 0x16a   : > { %v1329_v46 = vadd.f32 %v1328_v6, %v2544_v31 }
 0x171   : > { %v1787_v26 = vpop.f32.mrb[8].mxu1 }
 0x172   : > { %v1276_v34 = vpop.f32.mrb[9].mxu1  ;;  %v2556_v29 = vadd.f32 %v1787_v26, %v2450_v30 }
 0x173   : > { %v2549_v3 = vadd.f32 %v2450_v30, %v1276_v34  ;;  %v1788_v41 = vpop.f32.mrb[10].mxu1 }
 0x174   : > { %v1279_v18 = vpop.f32.mrb[11].mxu1  ;;  %v2560_v15 = vadd.f32 %v1788_v41, %v2450_v30 }
 0x175   : > { %v1330_v44 = vadd.f32 %v1329_v46, %v2549_v3  ;;  %v2553_v13 = vadd.f32 %v2450_v30, %v1279_v18 }
 0x177   : > { %v1331_v14 = vadd.f32 %v1330_v44, %v2553_v13 }
 0x179   : > { %v1332_v58 = vadd.f32 %v1331_v14, %v2556_v29 }
 0x17b   : > { %v1333_v54 = vadd.f32 %v1332_v58, %v2560_v15 }
 0x183   : > { %v1791_v56 = vpop.f32.mrb[12].mxu1 }
 0x184   : > { %v1292_v27 = vpop.f32.mrb[13].mxu1  ;;  %v2572_v40 = vadd.f32 %v1791_v56, %v2450_v30 }
 0x185   : > { %v2565_v62 = vadd.f32 %v2450_v30, %v1292_v27  ;;  %v1792_v10 = vpop.f32.mrb[14].mxu1 }
 0x186   : > { %v1295_v51 = vpop.f32.mrb[15].mxu1  ;;  %v2576_v28 = vadd.f32 %v1792_v10, %v2450_v30 }
 0x187   : > { %v1334_v16 = vadd.f32 %v1333_v54, %v2565_v62  ;;  %v2569_v49 = vadd.f32 %v2450_v30, %v1295_v51 }
 0x189   : > { %v1335_v50 = vadd.f32 %v1334_v16, %v2569_v49 }
 0x18b   : > { %v1336_v5 = vadd.f32 %v1335_v50, %v2572_v40 }
 0x18d   : > { %v1337_v59 = vadd.f32 %v1336_v5, %v2576_v28 }
 0x18f   : > { %v1338_v55 = vrot.slane %v1337_v59, 4 }
 0x191   : > { %v1339_v52 = vadd.f32 %v1338_v55, %v1337_v59 }
 0x193   : > { %v1340_v53 = vrot.slane %v1339_v52, 2 }
 0x195   : > { %v1341_v36 = vadd.f32 %v1340_v53, %v1339_v52 }
 0x197   : > { %v1342_v21 = vrot.slane %v1341_v36, 1 }
 0x199   : > { %v2580_v8 = vadd.f32 %v1342_v21, %v1341_v36 }
 0x19b   : > { %v2583_v11 = vmul.f32 0.00390625, %v2580_v8 }
 0x19d   : > { %v1345_v12 = vsub.f32 %v2456_v2, %v2583_v11  ;;  %v1346_v30 = vsub.f32 %v2453_v37, %v2583_v11  ;;  %v1347_v22 = vsub.f32 %v2461_v47, %v2583_v11  ;;  %v1348_v32 = vsub.f32 %v2465_v43, %v2583_v11 }
 0x19e   : > { %v1349_v23 = vsub.f32 %v2468_v42, %v2583_v11  ;;  %v1350_v26 = vsub.f32 %v2473_v24, %v2583_v11  ;;  %v1351_v37 = vsub.f32 %v2477_v61, %v2583_v11  ;;  %v1352_v18 = vsub.f32 %v2481_v33, %v2583_v11 }
 0x19f   : > { %v1377_v19 = vmul.f32 %v1345_v12, %v1345_v12  ;;  %v1378_v17 = vmul.f32 %v1346_v30, %v1346_v30  ;;  %v1379_v6 = vmul.f32 %v1347_v22, %v1347_v22  ;;  %v1380_v2 = vmul.f32 %v1348_v32, %v1348_v32 }
 0x1a0   : > { %v1381_v41 = vmul.f32 %v1349_v23, %v1349_v23  ;;  %v1382_v44 = vmul.f32 %v1350_v26, %v1350_v26  ;;  %v1353_v42 = vsub.f32 %v2484_v1, %v2583_v11  ;;  %v1383_v14 = vmul.f32 %v1351_v37, %v1351_v37 }
 0x1a1   : > { %v1409_v46 = vadd.f32 %v1378_v17, %v1377_v19  ;;  %v1354_v24 = vsub.f32 %v2489_v57, %v2583_v11  ;;  %v1384_v54 = vmul.f32 %v1352_v18, %v1352_v18  ;;  %v1355_v61 = vsub.f32 %v2493_v60, %v2583_v11 }
 0x1a2   : > { %v1385_v27 = vmul.f32 %v1353_v42, %v1353_v42  ;;  %v1356_v33 = vsub.f32 %v2497_v38, %v2583_v11  ;;  %v1357_v1 = vsub.f32 %v2500_v39, %v2583_v11  ;;  %v1358_v57 = vsub.f32 %v2505_v0, %v2583_v11 }
 0x1a3   : > { %v1410_v34 = vadd.f32 %v1409_v46, %v1379_v6  ;;  %v1386_v51 = vmul.f32 %v1354_v24, %v1354_v24  ;;  %v1387_v50 = vmul.f32 %v1355_v61, %v1355_v61  ;;  %v1359_v60 = vsub.f32 %v2509_v4, %v2583_v11 }
 0x1a4   : > { %v1388_v59 = vmul.f32 %v1356_v33, %v1356_v33  ;;  %v1389_v52 = vmul.f32 %v1357_v1, %v1357_v1  ;;  %v1360_v38 = vsub.f32 %v2513_v20, %v2583_v11  ;;  %v1390_v36 = vmul.f32 %v1358_v57, %v1358_v57 }
 0x1a5   : > { %v1411_v47 = vadd.f32 %v1410_v34, %v1380_v2  ;;  %v1361_v39 = vsub.f32 %v2516_v35, %v2583_v11  ;;  %v1391_v12 = vmul.f32 %v1359_v60, %v1359_v60  ;;  %v1362_v0 = vsub.f32 %v2521_v9, %v2583_v11 }
 0x1a6   : > { %v1392_v22 = vmul.f32 %v1360_v38, %v1360_v38  ;;  %v1363_v4 = vsub.f32 %v2525_v63, %v2583_v11  ;;  %v1364_v20 = vsub.f32 %v2529_v48, %v2583_v11  ;;  %v1365_v35 = vsub.f32 %v2533_v45, %v2583_v11 }
 0x1a7   : > { %v1412_v43 = vadd.f32 %v1411_v47, %v1381_v41  ;;  %v1393_v17 = vmul.f32 %v1361_v39, %v1361_v39  ;;  %v1394_v23 = vmul.f32 %v1362_v0, %v1362_v0  ;;  %v1366_v9 = vsub.f32 %v2537_v25, %v2583_v11 }
 0x1a8   : > { %v1395_v46 = vmul.f32 %v1363_v4, %v1363_v4  ;;  %v1396_v2 = vmul.f32 %v1364_v20, %v1364_v20  ;;  %v1367_v63 = vsub.f32 %v2540_v7, %v2583_v11  ;;  %v1397_v37 = vmul.f32 %v1365_v35, %v1365_v35 }
 0x1a9   : > { %v1413_v58 = vadd.f32 %v1412_v43, %v1382_v44  ;;  %v1368_v48 = vsub.f32 %v2544_v31, %v2583_v11  ;;  %v1398_v47 = vmul.f32 %v1366_v9, %v1366_v9  ;;  %v1369_v45 = vsub.f32 %v2549_v3, %v2583_v11 }
 0x1aa   : > { %v1399_v44 = vmul.f32 %v1367_v63, %v1367_v63  ;;  %v1370_v25 = vsub.f32 %v2553_v13, %v2583_v11  ;;  %v1371_v7 = vsub.f32 %v2556_v29, %v2583_v11  ;;  %v1372_v31 = vsub.f32 %v2560_v15, %v2583_v11 }
 0x1ab   : > { %v1414_v56 = vadd.f32 %v1413_v58, %v1383_v14  ;;  %v1400_v42 = vmul.f32 %v1368_v48, %v1368_v48  ;;  %v1401_v58 = vmul.f32 %v1369_v45, %v1369_v45  ;;  %v1373_v3 = vsub.f32 %v2565_v62, %v2583_v11 }
 0x1ac   : > { %v1403_v61 = vmul.f32 %v1371_v7, %v1371_v7  ;;  %v1374_v13 = vsub.f32 %v2569_v49, %v2583_v11  ;;  %v1375_v29 = vsub.f32 %v2572_v40, %v2583_v11  ;;  %v1376_v15 = vsub.f32 %v2576_v28, %v2583_v11 }
 0x1ad   : > { %v1415_v10 = vadd.f32 %v1414_v56, %v1384_v54  ;;  %v1402_v54 = vmul.f32 %v1370_v25, %v1370_v25 }
 0x1ae   : > { %v1406_v1 = vmul.f32 %v1374_v13, %v1374_v13  ;;  %v1407_v62 = vmul.f32 %v1375_v29, %v1375_v29  ;;  %v1408_v57 = vmul.f32 %v1376_v15, %v1376_v15 }
 0x1af   : > { %v1416_v16 = vadd.f32 %v1415_v10, %v1385_v27  ;;  %v1404_v10 = vmul.f32 %v1372_v31, %v1372_v31 }
 0x1b1   : > { %v1417_v5 = vadd.f32 %v1416_v16, %v1386_v51  ;;  %v1405_v51 = vmul.f32 %v1373_v3, %v1373_v3 }
 0x1b3   : > { %v1418_v55 = vadd.f32 %v1417_v5, %v1387_v50 }
 0x1b5   : > { %v1419_v53 = vadd.f32 %v1418_v55, %v1388_v59 }
 0x1b7   : > { %v1420_v21 = vadd.f32 %v1419_v53, %v1389_v52 }
 0x1b9   : > { %v1421_v30 = vadd.f32 %v1420_v21, %v1390_v36 }
 0x1bb   : > { %v1422_v19 = vadd.f32 %v1421_v30, %v1391_v12 }
 0x1bd   : > { %v1423_v32 = vadd.f32 %v1422_v19, %v1392_v22 }
 0x1bf   : > { %v1424_v6 = vadd.f32 %v1423_v32, %v1393_v17 }
 0x1c1   : > { %v1425_v26 = vadd.f32 %v1424_v6, %v1394_v23 }
 0x1c3   : > { %v1426_v34 = vadd.f32 %v1425_v26, %v1395_v46 }
 0x1c5   : > { %v1427_v41 = vadd.f32 %v1426_v34, %v1396_v2 }
 0x1c7   : > { %v1428_v18 = vadd.f32 %v1427_v41, %v1397_v37 }
 0x1c9   : > { %v1429_v43 = vadd.f32 %v1428_v18, %v1398_v47 }
 0x1cb   : > { %v1430_v14 = vadd.f32 %v1429_v43, %v1399_v44 }
 0x1cd   : > { %v1431_v24 = vadd.f32 %v1430_v14, %v1400_v42 }
 0x1cf   : > { %v1432_v56 = vadd.f32 %v1431_v24, %v1401_v58 }
 0x1d1   : > { %v1433_v27 = vadd.f32 %v1432_v56, %v1402_v54 }
 0x1d3   : > { %v1434_v33 = vadd.f32 %v1433_v27, %v1403_v61 }
 0x1d5   : > { %v1435_v16 = vadd.f32 %v1434_v33, %v1404_v10 }
 0x1d7   : > { %v1436_v50 = vadd.f32 %v1435_v16, %v1405_v51 }
 0x1d9   : > { %v1437_v5 = vadd.f32 %v1436_v50, %v1406_v1 }
 0x1db   : > { %v1438_v59 = vadd.f32 %v1437_v5, %v1407_v62 }
 0x1dd   : > { %v1439_v55 = vadd.f32 %v1438_v59, %v1408_v57 }
 0x1df   : > { %v1440_v49 = vrot.slane %v1439_v55, 4 }
 0x1e1   : > { %v1441_v60 = vadd.f32 %v1440_v49, %v1439_v55 }
 0x1e3   : > { %v1442_v52 = vrot.slane %v1441_v60, 2 }
 0x1e5   : > { %v1443_v40 = vadd.f32 %v1442_v52, %v1441_v60 }
 0x1e7   : > { %v1444_v53 = vrot.slane %v1443_v40, 1 }
 0x1e9   : > { %v1445_v28 = vadd.f32 %v1444_v53, %v1443_v40 }
 0x1eb   : > { %v1447_v11 = vsel %vm1446_vm2, %v2580_v8, %v1445_v28 }
 0x1ec   : > { %1448 = vst [vmem:[%s190_s28] sm:$0x3] %v1447_v11 }
 0x1ed   : > { %1851 = shalt.err (!%p1848_p3)
}
 0x1ee   : > { %s1852_s11 = scalar_lea.hbm %s2654_s6, 32  ;;  %s1856_s14 = scalar_lea.hbm %s2701_s4, 64 }
 0x1ef   : > { %p1853_p4 = scmp.ne.s32.totalorder %s2654_s6, %s1852_s11  ;;  %p1857_p9 = scmp.lt.u32.totalorder %s2654_s6, %s2701_s4 }
 0x1f0   : > { %p1858_p10 = scmp.lt.u32.totalorder %s1856_s14, %s1852_s11  ;;  %p1860_p12 = scmp.lt.u32.totalorder %s1852_s11, %s2654_s6 }
 0x1f1   : > { %p1854_p7 = pnand %p1853_p4, %p1966_p5 }
 0x1f2   : > { %p1859_p11 = por %p1858_p10, %p1857_p9 }
 0x1f3   : > { %p1855_p8 = pneg %p1854_p7 }
 0x1f4   : > { %p1861_p13 = por %p1860_p12, %p1859_p11 }
 0x1f6   : > { %p1862_p0 = pnand %p1861_p13, %p1855_p8 }
 0x1f8   : > { %1865 = shalt.err (!%p1862_p0)
}
 0x1f9   : > { %1798 = dma.vmem_to_hbm [thread:$0]  (%p1966_p5), %s2656_s29, 32, %s2654_s6, %s1450_s7  }
 0x1fa PF: > { %p1804_p1 = scmp.ge.s32.totalorder %s1900_s18, 2  ;;  %s1475_s23 = sand.u32 1, %s1888_s15  }
 0x1fb   : > { %s1476_s27 = scalar_lea.sflag [#allocation3], %s1475_s23 }
 0x1fc   : > { %p1801_p2 = pnand %p1804_p1, %p1970_p6 }
 0x1fe   : > { %1883 = dma.done.wait (!%p1801_p2), %s1476_s27, 32  }
 0x1ff   : > { %1885 = vsyncadd (!%p1801_p2), %s1476_s27, 4294967264  ;;  %p14_p3 = scmp.ge.s32.totalorder %s1953_s21, 4   ;;  %s2704_s15 = smov %s1892_s16 }
 0x200   : > { %s2705_s16 = smov %s1896_s17  ;;  %s2706_s17 = smov %s1964_s24 }
 0x201   : > { %s2707_s18 = smov %s1953_s21  ;;  %16 = sbr.rel (!%p14_p3) target bundleno = 3 (0x3), region = 73 }
 0x208   :  { %1481 = vsyncpa [#allocation3], 1 }
 0x209   :  { %1483 = vsyncpa [#allocation3 + $0x1], 1 }

</bundles_post_ra>
